<compile_context>
chip_gen: v6e
topology: v6e:2x2x1
jax: 0.10.0
libtpu: 0.0.40
codegen_flags: <defaults>
</compile_context>

<pallas_src>
import functools
import math

import jax
import jax.numpy as jnp
from jax.experimental import pallas as pl
from jax.experimental.pallas import tpu as pltpu

LN_EPS = 1e-5


def _selfattn_block_kernel(
    x_ref,                                                # (1, S, E) bf16, full sequence (resident per batch)
    wq_ref, bq_ref, wk_ref, bk_ref, wv_ref, bv_ref,        # stacked per-head weights, grid-invariant
    wo_ref, bo_ref, gamma_ref, beta_ref,
    w1_ref, b1_ref, w2_ref, b2_ref,
    out_ref,                                              # (1, TQ, E)
    acc_ref, kln_ref, k_cache_ref, v_cache_ref, mask_ref,
    *, q_tile: int, seq_len: int, scale: float,
):
    qt = pl.program_id(1)
    h = pl.program_id(2)

    gamma = gamma_ref[...]          # (1, E) f32
    beta = beta_ref[...]            # (1, E) f32

    def layer_norm(v):              # f32 in / f32 out (shared LN params)
        mu = jnp.mean(v, axis=-1, keepdims=True)
        c = v - mu
        var = jnp.mean(jnp.square(c), axis=-1, keepdims=True)
        return c * jax.lax.rsqrt(var + LN_EPS) * gamma + beta

    # ---- per-BATCH caches (batch axis is outermost, so qt resets to 0 at every
    #      batch boundary -> caches are rebuilt exactly once per batch) --------
    @pl.when(jnp.logical_and(qt == 0, h == 0))
    def _batch_init():
        # LayerNorm(x) feeds only the K projection: compute once per batch.
        kln_ref[...] = layer_norm(x_ref[0].astype(jnp.float32)).astype(jnp.bfloat16)

    @pl.when(qt == 0)
    def _project_kv():
        # K/V projections depend only on (batch, head): compute once per batch
        # and reuse for every query tile.
        k_h = jnp.dot(kln_ref[...], wk_ref[h],
                      preferred_element_type=jnp.float32) + bk_ref[h]      # (S, Dh)
        v_h = jnp.dot(x_ref[0], wv_ref[h],
                      preferred_element_type=jnp.float32) + bv_ref[h]      # (S, Dh)
        k_cache_ref[h] = k_h.astype(jnp.bfloat16)
        v_cache_ref[h] = v_h.astype(jnp.bfloat16)

    # ---- per-q-tile init: accumulator + additive causal mask (hoisted out of
    #      the head loop; JAX does not CSE broadcast_in_dim) -------------------
    @pl.when(h == 0)
    def _tile_init():
        acc_ref[...] = jnp.zeros_like(acc_ref)
        row = jax.lax.broadcasted_iota(jnp.int32, (q_tile, seq_len), 0) + qt * q_tile
        col = jax.lax.broadcasted_iota(jnp.int32, (q_tile, seq_len), 1)
        mask_ref[...] = jnp.where(col <= row, 0.0, -1e30).astype(jnp.float32)

    # Query tile sliced from the resident full-sequence block (sublane slice;
    # no second x DMA stream).
    start = pl.multiple_of(qt * q_tile, q_tile)
    x_q_bf = x_ref[0, pl.ds(start, q_tile), :]                             # (TQ, E) bf16

    # ---- this head's attention: bf16 MXU operands, f32 accumulation ----------
    q_h = (jnp.dot(x_q_bf, wq_ref[h], preferred_element_type=jnp.float32)
           + bq_ref[h]) * scale                                            # (TQ, Dh) f32

    s = jax.lax.dot_general(q_h.astype(jnp.bfloat16), k_cache_ref[h],
                            dimension_numbers=(((1,), (1,)), ((), ())),
                            preferred_element_type=jnp.float32)            # (TQ, S)
    s = s + mask_ref[...]
    s = s - jnp.max(s, axis=-1, keepdims=True)
    p = jnp.exp(s)
    p = p * pl.reciprocal(jnp.sum(p, axis=-1, keepdims=True), approx=True)
    # TODO(synk): attention-weight dropout omitted (eval mode / dropout_p = 0).
    attn_h = jnp.dot(p.astype(jnp.bfloat16), v_cache_ref[h],
                     preferred_element_type=jnp.float32)                   # (TQ, Dh)

    # Accumulate this head's slice of the output projection in f32.
    # TODO(synk): when Dh % 128 == 0, replace with a lane-offset scatter of
    #             attn_h + one (TQ,E)x(E,E) GEMM in the finalize step.
    acc_ref[...] += jnp.dot(attn_h.astype(jnp.bfloat16), wo_ref[h],
                            preferred_element_type=jnp.float32)            # (TQ, E)

    @pl.when(h == pl.num_programs(2) - 1)
    def _finalize():
        x_q_f32 = x_q_bf.astype(jnp.float32)
        x_attn = acc_ref[...] + bo_ref[...]                                # (TQ, E)
        y1 = x_q_f32 + layer_norm(x_attn)
        h1 = jnp.maximum(
            jnp.dot(y1.astype(jnp.bfloat16), w1_ref[...],
                    preferred_element_type=jnp.float32) + b1_ref[...], 0.0)
        ffn = jnp.dot(h1.astype(jnp.bfloat16), w2_ref[...],
                      preferred_element_type=jnp.float32) + b2_ref[...]
        y2 = y1 + layer_norm(ffn)
        out_ref[0] = y2.astype(out_ref.dtype)
        # Padding mask applied in the wrapper (lane-dense, fused elementwise).


def self_attn_block(x, padding_mask, params, *, num_heads, q_block=128,
                    single_buffer_invariant=True):
    """x: (B, S, E) float32; padding_mask: (B, S) float32 (1 keep / 0 pad)."""
    B, S, E = x.shape
    assert E % num_heads == 0
    Dh = E // num_heads
    TQ = S if S <= q_block else q_block
    assert S % TQ == 0, "seq_len must be a multiple of the query tile"
    n_qt = S // TQ

    bf = jnp.bfloat16
    f32 = jnp.float32

    # Single bf16 HBM stream for x (halves the dominant input stream).
    x_bf = x.astype(bf)

    # Pre-split per-head weights on the host; they stay VMEM-resident (constant
    # index_map), the kernel slices heads with a cheap leading-axis index.
    wq_h = params["wq_t"].reshape(E, num_heads, Dh).transpose(1, 0, 2).astype(bf)
    wk_h = params["wk_t"].reshape(E, num_heads, Dh).transpose(1, 0, 2).astype(bf)
    wv_h = params["wv_t"].reshape(E, num_heads, Dh).transpose(1, 0, 2).astype(bf)
    wo_h = params["wo_t"].reshape(num_heads, Dh, E).astype(bf)
    bq_h = params["bq"].reshape(num_heads, 1, Dh).astype(f32)
    bk_h = params["bk"].reshape(num_heads, 1, Dh).astype(f32)
    bv_h = params["bv"].reshape(num_heads, 1, Dh).astype(f32)
    bo = params["bo"].astype(f32)
    gamma = params["ln_gamma"].astype(f32)
    beta = params["ln_beta"].astype(f32)
    w1 = params["w1_t"].astype(bf)
    b1 = params["b1"].astype(f32)
    w2 = params["w2_t"].astype(bf)
    b2 = params["b2"].astype(f32)

    use_sb = single_buffer_invariant and hasattr(pl, "Buffered")

    def inv_spec(a):   # grid-invariant: constant block index, single-buffered if possible
        idx = lambda b, q, h, _nd=a.ndim: (0,) * _nd
        if use_sb:
            return pl.BlockSpec(a.shape, idx, pipeline_mode=pl.Buffered(1))
        return pl.BlockSpec(a.shape, idx)

    in_specs = [
        pl.BlockSpec((1, S, E), lambda b, q, h: (b, 0, 0)),    # x: full sequence, resident per batch
        inv_spec(wq_h), inv_spec(bq_h),
        inv_spec(wk_h), inv_spec(bk_h),
        inv_spec(wv_h), inv_spec(bv_h),
        inv_spec(wo_h),
        inv_spec(bo), inv_spec(gamma), inv_spec(beta),
        inv_spec(w1), inv_spec(b1), inv_spec(w2), inv_spec(b2),
    ]

    kernel = functools.partial(_selfattn_block_kernel, q_tile=TQ, seq_len=S,
                               scale=1.0 / math.sqrt(Dh))

    # Generation-aware VMEM limit (do NOT hard-code 64 MiB — that is the whole
    # physical VMEM per TensorCore on v7x).
    vmem_limit = None
    try:
        cap = int(pltpu.get_tpu_info().vmem_capacity_bytes)
        vmem_limit = min((cap * 3) // 4, 96 * 1024 * 1024)
    except Exception:
        vmem_limit = None

    cost = pl.CostEstimate(
        flops=int(B * (12 * S * E * E + 4 * S * S * E)),
        transcendentals=int(B * num_heads * S * S),
        bytes_accessed=int(6 * B * S * E + 24 * E * E),
    )

    out = pl.pallas_call(
        kernel,
        out_shape=jax.ShapeDtypeStruct((B, S, E), x.dtype),
        grid=(B, n_qt, num_heads),
        in_specs=in_specs,
        out_specs=pl.BlockSpec((1, TQ, E), lambda b, q, h: (b, q, 0)),
        scratch_shapes=[
            pltpu.VMEM((TQ, E), jnp.float32),              # output-projection accumulator
            pltpu.VMEM((S, E), jnp.bfloat16),              # LayerNorm(x) cache (K path), per batch
            pltpu.VMEM((num_heads, S, Dh), jnp.bfloat16),  # per-batch K cache
            pltpu.VMEM((num_heads, S, Dh), jnp.bfloat16),  # per-batch V cache
            pltpu.VMEM((TQ, S), jnp.float32),              # additive causal mask, per q-tile
        ],
        compiler_params=pltpu.CompilerParams(
            dimension_semantics=("parallel", "arbitrary", "arbitrary"),
            vmem_limit_bytes=vmem_limit,
        ),
        cost_estimate=cost,
    )(x_bf, wq_h, bq_h, wk_h, bk_h, wv_h, bv_h, wo_h,
      bo, gamma, beta, w1, b1, w2, b2)

    # Padding mask as one fused lane-dense elementwise op in the wrapper.
    return out * padding_mask[..., None].astype(out.dtype)


def reference(x, padding_mask, params, *, num_heads):
    """Pure-JAX f32 reference mirroring the PyTorch forward (eval mode)."""
    B, S, E = x.shape
    Dh = E // num_heads
    g, b = params["ln_gamma"], params["ln_beta"]

    def ln(v):
        mu = jnp.mean(v, axis=-1, keepdims=True)
        var = jnp.mean(jnp.square(v - mu), axis=-1, keepdims=True)
        return (v - mu) * jax.lax.rsqrt(var + LN_EPS) * g + b

    x_ln = ln(x)
    q = x @ params["wq_t"] + params["bq"]
    k = x_ln @ params["wk_t"] + params["bk"]
    v = x @ params["wv_t"] + params["bv"]
    q = q.reshape(B, S, num_heads, Dh).transpose(0, 2, 1, 3)
    k = k.reshape(B, S, num_heads, Dh).transpose(0, 2, 1, 3)
    v = v.reshape(B, S, num_heads, Dh).transpose(0, 2, 1, 3)
    s = jnp.einsum("bhqd,bhkd->bhqk", q, k) / math.sqrt(Dh)
    mask = jnp.tril(jnp.ones((S, S), dtype=bool))
    s = jnp.where(mask, s, -1e30)
    p = jax.nn.softmax(s, axis=-1)
    attn = jnp.einsum("bhqk,bhkd->bhqd", p, v).transpose(0, 2, 1, 3).reshape(B, S, E)
    x_attn = attn @ params["wo_t"] + params["bo"]
    y1 = x + ln(x_attn)
    ffnn = jnp.maximum(y1 @ params["w1_t"] + params["b1"], 0.0) @ params["w2_t"] + params["b2"]
    y2 = y1 + ln(ffnn)
    return y2 * padding_mask[..., None]


def init_params(key, hidden_dim):
    keys = jax.random.split(key, 12)
    scale = 1.0 / math.sqrt(hidden_dim)
    E = hidden_dim

    def w(k):
        return (jax.random.uniform(k, (E, E), jnp.float32) * 2.0 - 1.0) * scale

    def bias(k):
        return (jax.random.uniform(k, (1, E), jnp.float32) * 2.0 - 1.0) * scale

    return {
        # MultiheadAttention in_proj split into q/k/v, stored pre-transposed (in, out)
        "wq_t": w(keys[0]), "bq": bias(keys[1]),
        "wk_t": w(keys[2]), "bk": bias(keys[3]),
        "wv_t": w(keys[4]), "bv": bias(keys[5]),
        # out_proj
        "wo_t": w(keys[6]), "bo": bias(keys[7]),
        # shared LayerNorm
        "ln_gamma": jnp.ones((1, E), jnp.float32),
        "ln_beta": jnp.zeros((1, E), jnp.float32),
        # PointWiseFFNN
        "w1_t": w(keys[8]), "b1": bias(keys[9]),
        "w2_t": w(keys[10]), "b2": bias(keys[11]),
    }


if __name__ == "__main__":
    B, S, E, H = 2, 8, 32, 2   # batch, seq, hidden_dim, num_heads

    key = jax.random.PRNGKey(0)
    kx, kp = jax.random.split(key)
    x = jax.random.normal(kx, (B, S, E), jnp.float32)
    padding_mask = jnp.ones((B, S), jnp.float32).at[1, S - 2:].set(0.0)  # pad tail of batch 1
    params = init_params(kp, E)

    ref = reference(x, padding_mask, params, num_heads=H)

    def run(single_buffer):
        o = self_attn_block(x, padding_mask, params, num_heads=H,
                            single_buffer_invariant=single_buffer)
        return jax.block_until_ready(o)

    try:
        out = run(True)
        ok = bool(jnp.allclose(out, ref, rtol=2e-2, atol=2e-2))
    except Exception:
        out, ok = None, False
    if not ok:
        # Fallback: default double-buffering if pl.Buffered(1) is unsupported here.
        out = run(False)
        ok = bool(jnp.allclose(out, ref, rtol=2e-2, atol=2e-2))

    assert out.shape == (B, S, E)
    assert ok, f"max abs err = {float(jnp.max(jnp.abs(out - ref)))}"
    print("KERNEL_OK")
</pallas_src>

<mosaic_0001>
module attributes {stable_mosaic.version = 11 : i64} {
  func.func @_selfattn_block_kernel(%arg0: i32, %arg1: i32, %arg2: i32, %arg3: memref<1x8x32xbf16, #tpu.memory_space<vmem>>, %arg4: memref<2x32x16xbf16, #tpu.memory_space<vmem>>, %arg5: memref<2x1x16xf32, #tpu.memory_space<vmem>>, %arg6: memref<2x32x16xbf16, #tpu.memory_space<vmem>>, %arg7: memref<2x1x16xf32, #tpu.memory_space<vmem>>, %arg8: memref<2x32x16xbf16, #tpu.memory_space<vmem>>, %arg9: memref<2x1x16xf32, #tpu.memory_space<vmem>>, %arg10: memref<2x16x32xbf16, #tpu.memory_space<vmem>>, %arg11: memref<1x32xf32, #tpu.memory_space<vmem>>, %arg12: memref<1x32xf32, #tpu.memory_space<vmem>>, %arg13: memref<1x32xf32, #tpu.memory_space<vmem>>, %arg14: memref<32x32xbf16, #tpu.memory_space<vmem>>, %arg15: memref<1x32xf32, #tpu.memory_space<vmem>>, %arg16: memref<32x32xbf16, #tpu.memory_space<vmem>>, %arg17: memref<1x32xf32, #tpu.memory_space<vmem>>, %arg18: memref<1x8x32xf32, #tpu.memory_space<vmem>>, %arg19: memref<8x32xf32, #tpu.memory_space<vmem>>, %arg20: memref<8x32xbf16, #tpu.memory_space<vmem>>, %arg21: memref<2x8x16xbf16, #tpu.memory_space<vmem>>, %arg22: memref<2x8x16xbf16, #tpu.memory_space<vmem>>, %arg23: memref<8x8xf32, #tpu.memory_space<vmem>>) attributes {dimension_semantics = [#tpu.dimension_semantics<parallel>, #tpu.dimension_semantics<arbitrary>, #tpu.dimension_semantics<arbitrary>], iteration_bounds = array<i64: 2, 1, 2>, scalar_prefetch = 0 : i64, scratch_operands = 5 : i64, tpu.core_type = #tpu.core_type<tc>, window_params = [{transform_indices = @transform_0, window_bounds = array<i64: 1, 8, 32>}, {pipeline_mode = #tpu.pipeline_mode<synchronous>, transform_indices = @transform_1, window_bounds = array<i64: 2, 32, 16>}, {pipeline_mode = #tpu.pipeline_mode<synchronous>, transform_indices = @transform_2, window_bounds = array<i64: 2, 1, 16>}, {pipeline_mode = #tpu.pipeline_mode<synchronous>, transform_indices = @transform_3, window_bounds = array<i64: 2, 32, 16>}, {pipeline_mode = #tpu.pipeline_mode<synchronous>, transform_indices = @transform_4, window_bounds = array<i64: 2, 1, 16>}, {pipeline_mode = #tpu.pipeline_mode<synchronous>, transform_indices = @transform_5, window_bounds = array<i64: 2, 32, 16>}, {pipeline_mode = #tpu.pipeline_mode<synchronous>, transform_indices = @transform_6, window_bounds = array<i64: 2, 1, 16>}, {pipeline_mode = #tpu.pipeline_mode<synchronous>, transform_indices = @transform_7, window_bounds = array<i64: 2, 16, 32>}, {pipeline_mode = #tpu.pipeline_mode<synchronous>, transform_indices = @transform_8, window_bounds = array<i64: 1, 32>}, {pipeline_mode = #tpu.pipeline_mode<synchronous>, transform_indices = @transform_9, window_bounds = array<i64: 1, 32>}, {pipeline_mode = #tpu.pipeline_mode<synchronous>, transform_indices = @transform_10, window_bounds = array<i64: 1, 32>}, {pipeline_mode = #tpu.pipeline_mode<synchronous>, transform_indices = @transform_11, window_bounds = array<i64: 32, 32>}, {pipeline_mode = #tpu.pipeline_mode<synchronous>, transform_indices = @transform_12, window_bounds = array<i64: 1, 32>}, {pipeline_mode = #tpu.pipeline_mode<synchronous>, transform_indices = @transform_13, window_bounds = array<i64: 32, 32>}, {pipeline_mode = #tpu.pipeline_mode<synchronous>, transform_indices = @transform_14, window_bounds = array<i64: 1, 32>}, {transform_indices = @transform_15, window_bounds = array<i64: 1, 8, 32>}]} {
    %c0 = arith.constant 0 : index
    %c0_0 = arith.constant 0 : index
    %0 = vector.load %arg12[%c0, %c0_0] : memref<1x32xf32, #tpu.memory_space<vmem>>, vector<1x32xf32>
    %c0_1 = arith.constant 0 : index
    %c0_2 = arith.constant 0 : index
    %1 = vector.load %arg13[%c0_1, %c0_2] : memref<1x32xf32, #tpu.memory_space<vmem>>, vector<1x32xf32>
    %c0_i32 = arith.constant 0 : i32
    %2 = arith.cmpi eq, %arg1, %c0_i32 : i32
    %c0_i32_3 = arith.constant 0 : i32
    %3 = arith.cmpi eq, %arg2, %c0_i32_3 : i32
    %4 = arith.andi %2, %3 : i1
    %5 = arith.extui %4 : i1 to i32
    %c0_i32_4 = arith.constant 0 : i32
    %6 = arith.cmpi ne, %5, %c0_i32_4 : i32
    scf.if %6 {
      %c0_34 = arith.constant 0 : index
      %c0_35 = arith.constant 0 : index
      %c0_36 = arith.constant 0 : index
      %62 = vector.load %arg3[%c0_34, %c0_35, %c0_36] : memref<1x8x32xbf16, #tpu.memory_space<vmem>>, vector<1x8x32xbf16>
      %63 = vector.shape_cast %62 : vector<1x8x32xbf16> to vector<8x32xbf16>
      %64 = arith.extf %63 : vector<8x32xbf16> to vector<8x32xf32>
      %cst_37 = arith.constant dense<0.000000e+00> : vector<8xf32>
      %65 = vector.multi_reduction <add>, %64, %cst_37 [1] : vector<8x32xf32> to vector<8xf32>
      %66 = vector.shape_cast %65 : vector<8xf32> to vector<8x1xf32>
      %cst_38 = arith.constant 3.200000e+01 : f32
      %67 = vector.broadcast %cst_38 : f32 to vector<8x1xf32>
      %68 = arith.divf %66, %67 : vector<8x1xf32>
      %69 = vector.broadcast %68 : vector<8x1xf32> to vector<8x32xf32>
      %70 = arith.subf %64, %69 : vector<8x32xf32>
      %71 = arith.mulf %70, %70 : vector<8x32xf32>
      %cst_39 = arith.constant dense<0.000000e+00> : vector<8xf32>
      %72 = vector.multi_reduction <add>, %71, %cst_39 [1] : vector<8x32xf32> to vector<8xf32>
      %73 = vector.shape_cast %72 : vector<8xf32> to vector<8x1xf32>
      %cst_40 = arith.constant 3.200000e+01 : f32
      %74 = vector.broadcast %cst_40 : f32 to vector<8x1xf32>
      %75 = arith.divf %73, %74 : vector<8x1xf32>
      %cst_41 = arith.constant 9.99999974E-6 : f32
      %76 = vector.broadcast %cst_41 : f32 to vector<8x1xf32>
      %77 = arith.addf %75, %76 : vector<8x1xf32>
      %78 = math.rsqrt %77 : vector<8x1xf32>
      %79 = vector.broadcast %78 : vector<8x1xf32> to vector<8x32xf32>
      %80 = arith.mulf %70, %79 : vector<8x32xf32>
      %81 = vector.broadcast %0 : vector<1x32xf32> to vector<8x32xf32>
      %82 = arith.mulf %80, %81 : vector<8x32xf32>
      %83 = vector.broadcast %1 : vector<1x32xf32> to vector<8x32xf32>
      %84 = arith.addf %82, %83 : vector<8x32xf32>
      %85 = arith.truncf %84 : vector<8x32xf32> to vector<8x32xbf16>
      %c0_42 = arith.constant 0 : index
      %c0_43 = arith.constant 0 : index
      %86 = vector.load %arg20[%c0_42, %c0_43] : memref<8x32xbf16, #tpu.memory_space<vmem>>, vector<8x32xbf16>
      tpu.vector_store %arg20[%c0_42, %c0_43], %85 {strides = array<i32>} : memref<8x32xbf16, #tpu.memory_space<vmem>>, vector<8x32xbf16>,
    } else {
    }
    %c0_i32_5 = arith.constant 0 : i32
    %7 = arith.cmpi eq, %arg1, %c0_i32_5 : i32
    %8 = arith.extui %7 : i1 to i32
    %c0_i32_6 = arith.constant 0 : i32
    %9 = arith.cmpi ne, %8, %c0_i32_6 : i32
    scf.if %9 {
      %c0_34 = arith.constant 0 : index
      %c0_35 = arith.constant 0 : index
      %62 = vector.load %arg20[%c0_34, %c0_35] : memref<8x32xbf16, #tpu.memory_space<vmem>>, vector<8x32xbf16>
      %63 = arith.index_cast %arg2 : i32 to index
      %c0_36 = arith.constant 0 : index
      %c0_37 = arith.constant 0 : index
      %64 = vector.load %arg6[%63, %c0_36, %c0_37] : memref<2x32x16xbf16, #tpu.memory_space<vmem>>, vector<1x32x16xbf16>
      %65 = vector.shape_cast %64 : vector<1x32x16xbf16> to vector<32x16xbf16>
      %cst_38 = arith.constant dense<0.000000e+00> : vector<8x16xf32>
      %66 = tpu.matmul %62, %65, %cst_38 {dimension_numbers = #tpu.dot_dimension_numbers<[1], [0], [0], [1], [0, 0, 1, 1], [], []>} : vector<8x32xbf16>, vector<32x16xbf16>, vector<8x16xf32> -> vector<8x16xf32>
      %67 = arith.index_cast %arg2 : i32 to index
      %c0_39 = arith.constant 0 : index
      %c0_40 = arith.constant 0 : index
      %68 = vector.load %arg7[%67, %c0_39, %c0_40] : memref<2x1x16xf32, #tpu.memory_space<vmem>>, vector<1x1x16xf32>
      %69 = vector.shape_cast %68 : vector<1x1x16xf32> to vector<1x16xf32>
      %70 = vector.broadcast %69 : vector<1x16xf32> to vector<8x16xf32>
      %71 = arith.addf %66, %70 : vector<8x16xf32>
      %c0_41 = arith.constant 0 : index
      %c0_42 = arith.constant 0 : index
      %c0_43 = arith.constant 0 : index
      %72 = vector.load %arg3[%c0_41, %c0_42, %c0_43] : memref<1x8x32xbf16, #tpu.memory_space<vmem>>, vector<1x8x32xbf16>
      %73 = vector.shape_cast %72 : vector<1x8x32xbf16> to vector<8x32xbf16>
      %74 = arith.index_cast %arg2 : i32 to index
      %c0_44 = arith.constant 0 : index
      %c0_45 = arith.constant 0 : index
      %75 = vector.load %arg8[%74, %c0_44, %c0_45] : memref<2x32x16xbf16, #tpu.memory_space<vmem>>, vector<1x32x16xbf16>
      %76 = vector.shape_cast %75 : vector<1x32x16xbf16> to vector<32x16xbf16>
      %cst_46 = arith.constant dense<0.000000e+00> : vector<8x16xf32>
      %77 = tpu.matmul %73, %76, %cst_46 {dimension_numbers = #tpu.dot_dimension_numbers<[1], [0], [0], [1], [0, 0, 1, 1], [], []>} : vector<8x32xbf16>, vector<32x16xbf16>, vector<8x16xf32> -> vector<8x16xf32>
      %78 = arith.index_cast %arg2 : i32 to index
      %c0_47 = arith.constant 0 : index
      %c0_48 = arith.constant 0 : index
      %79 = vector.load %arg9[%78, %c0_47, %c0_48] : memref<2x1x16xf32, #tpu.memory_space<vmem>>, vector<1x1x16xf32>
      %80 = vector.shape_cast %79 : vector<1x1x16xf32> to vector<1x16xf32>
      %81 = vector.broadcast %80 : vector<1x16xf32> to vector<8x16xf32>
      %82 = arith.addf %77, %81 : vector<8x16xf32>
      %83 = arith.truncf %71 : vector<8x16xf32> to vector<8x16xbf16>
      %84 = arith.index_cast %arg2 : i32 to index
      %c0_49 = arith.constant 0 : index
      %c0_50 = arith.constant 0 : index
      %85 = vector.load %arg21[%84, %c0_49, %c0_50] : memref<2x8x16xbf16, #tpu.memory_space<vmem>>, vector<1x8x16xbf16>
      %86 = vector.shape_cast %85 : vector<1x8x16xbf16> to vector<8x16xbf16>
      %87 = vector.shape_cast %83 : vector<8x16xbf16> to vector<1x8x16xbf16>
      tpu.vector_store %arg21[%84, %c0_49, %c0_50], %87 {strides = array<i32>} : memref<2x8x16xbf16, #tpu.memory_space<vmem>>, vector<1x8x16xbf16>,
      %88 = arith.truncf %82 : vector<8x16xf32> to vector<8x16xbf16>
      %89 = arith.index_cast %arg2 : i32 to index
      %c0_51 = arith.constant 0 : index
      %c0_52 = arith.constant 0 : index
      %90 = vector.load %arg22[%89, %c0_51, %c0_52] : memref<2x8x16xbf16, #tpu.memory_space<vmem>>, vector<1x8x16xbf16>
      %91 = vector.shape_cast %90 : vector<1x8x16xbf16> to vector<8x16xbf16>
      %92 = vector.shape_cast %88 : vector<8x16xbf16> to vector<1x8x16xbf16>
      tpu.vector_store %arg22[%89, %c0_51, %c0_52], %92 {strides = array<i32>} : memref<2x8x16xbf16, #tpu.memory_space<vmem>>, vector<1x8x16xbf16>,
    } else {
    }
    %c0_i32_7 = arith.constant 0 : i32
    %10 = arith.cmpi eq, %arg2, %c0_i32_7 : i32
    %11 = arith.extui %10 : i1 to i32
    %c0_i32_8 = arith.constant 0 : i32
    %12 = arith.cmpi ne, %11, %c0_i32_8 : i32
    scf.if %12 {
      %cst_34 = arith.constant 0.000000e+00 : f32
      %62 = vector.broadcast %cst_34 : f32 to vector<8x32xf32>
      %c0_35 = arith.constant 0 : index
      %c0_36 = arith.constant 0 : index
      %63 = vector.load %arg19[%c0_35, %c0_36] : memref<8x32xf32, #tpu.memory_space<vmem>>, vector<8x32xf32>
      tpu.vector_store %arg19[%c0_35, %c0_36], %62 {strides = array<i32>} : memref<8x32xf32, #tpu.memory_space<vmem>>, vector<8x32xf32>,
      %64 = tpu.iota {dimensions = array<i32: 0>} : vector<8x8xi32>
      %c8_i32_37 = arith.constant 8 : i32
      %65 = arith.muli %arg1, %c8_i32_37 : i32
      %66 = vector.broadcast %65 : i32 to vector<8x8xi32>
      %67 = arith.addi %64, %66 : vector<8x8xi32>
      %68 = tpu.iota {dimensions = array<i32: 1>} : vector<8x8xi32>
      %69 = arith.cmpi sle, %68, %67 : vector<8x8xi32>
      %cst_38 = arith.constant 0.000000e+00 : f32
      %cst_39 = arith.constant -1.000000e+30 : f32
      %70 = vector.broadcast %cst_38 : f32 to vector<8x8xf32>
      %71 = vector.broadcast %cst_39 : f32 to vector<8x8xf32>
      %72 = arith.select %69, %70, %71 : vector<8x8xi1>, vector<8x8xf32>
      %c0_40 = arith.constant 0 : index
      %c0_41 = arith.constant 0 : index
      %73 = vector.load %arg23[%c0_40, %c0_41] : memref<8x8xf32, #tpu.memory_space<vmem>>, vector<8x8xf32>
      tpu.vector_store %arg23[%c0_40, %c0_41], %72 {strides = array<i32>} : memref<8x8xf32, #tpu.memory_space<vmem>>, vector<8x8xf32>,
    } else {
    }
    %c8_i32 = arith.constant 8 : i32
    %13 = arith.muli %arg1, %c8_i32 : i32
    %14 = tpu.assume_multiple %13, 8 : i32
    %c0_9 = arith.constant 0 : index
    %15 = arith.index_cast %14 : i32 to index
    %c0_10 = arith.constant 0 : index
    %16 = vector.load %arg3[%c0_9, %15, %c0_10] : memref<1x8x32xbf16, #tpu.memory_space<vmem>>, vector<1x8x32xbf16>
    %17 = vector.shape_cast %16 : vector<1x8x32xbf16> to vector<8x32xbf16>
    %18 = arith.index_cast %arg2 : i32 to index
    %c0_11 = arith.constant 0 : index
    %c0_12 = arith.constant 0 : index
    %19 = vector.load %arg4[%18, %c0_11, %c0_12] : memref<2x32x16xbf16, #tpu.memory_space<vmem>>, vector<1x32x16xbf16>
    %20 = vector.shape_cast %19 : vector<1x32x16xbf16> to vector<32x16xbf16>
    %cst = arith.constant dense<0.000000e+00> : vector<8x16xf32>
    %21 = tpu.matmul %17, %20, %cst {dimension_numbers = #tpu.dot_dimension_numbers<[1], [0], [0], [1], [0, 0, 1, 1], [], []>} : vector<8x32xbf16>, vector<32x16xbf16>, vector<8x16xf32> -> vector<8x16xf32>
    %22 = arith.index_cast %arg2 : i32 to index
    %c0_13 = arith.constant 0 : index
    %c0_14 = arith.constant 0 : index
    %23 = vector.load %arg5[%22, %c0_13, %c0_14] : memref<2x1x16xf32, #tpu.memory_space<vmem>>, vector<1x1x16xf32>
    %24 = vector.shape_cast %23 : vector<1x1x16xf32> to vector<1x16xf32>
    %25 = vector.broadcast %24 : vector<1x16xf32> to vector<8x16xf32>
    %26 = arith.addf %21, %25 : vector<8x16xf32>
    %cst_15 = arith.constant 2.500000e-01 : f32
    %27 = vector.broadcast %cst_15 : f32 to vector<8x16xf32>
    %28 = arith.mulf %26, %27 : vector<8x16xf32>
    %29 = arith.truncf %28 : vector<8x16xf32> to vector<8x16xbf16>
    %30 = arith.index_cast %arg2 : i32 to index
    %c0_16 = arith.constant 0 : index
    %c0_17 = arith.constant 0 : index
    %31 = vector.load %arg21[%30, %c0_16, %c0_17] : memref<2x8x16xbf16, #tpu.memory_space<vmem>>, vector<1x8x16xbf16>
    %32 = vector.shape_cast %31 : vector<1x8x16xbf16> to vector<8x16xbf16>
    %cst_18 = arith.constant dense<0.000000e+00> : vector<8x8xf32>
    %33 = tpu.matmul %29, %32, %cst_18 {dimension_numbers = #tpu.dot_dimension_numbers<[1], [1], [0], [0], [0, 0, 1, 0], [], []>} : vector<8x16xbf16>, vector<8x16xbf16>, vector<8x8xf32> -> vector<8x8xf32>
    %c0_19 = arith.constant 0 : index
    %c0_20 = arith.constant 0 : index
    %34 = vector.load %arg23[%c0_19, %c0_20] : memref<8x8xf32, #tpu.memory_space<vmem>>, vector<8x8xf32>
    %35 = arith.addf %33, %34 : vector<8x8xf32>
    %cst_21 = arith.constant dense<0xFF800000> : vector<8xf32>
    %36 = vector.multi_reduction <maximumf>, %35, %cst_21 [1] : vector<8x8xf32> to vector<8xf32>
    %37 = vector.shape_cast %36 : vector<8xf32> to vector<8x1xf32>
    %38 = vector.broadcast %37 : vector<8x1xf32> to vector<8x8xf32>
    %39 = arith.subf %35, %38 : vector<8x8xf32>
    %40 = math.exp %39 : vector<8x8xf32>
    %cst_22 = arith.constant dense<0.000000e+00> : vector<8xf32>
    %41 = vector.multi_reduction <add>, %40, %cst_22 [1] : vector<8x8xf32> to vector<8xf32>
    %42 = vector.shape_cast %41 : vector<8xf32> to vector<8x1xf32>
    %43 = tpu.reciprocal %42 {approx = true} : vector<8x1xf32> -> vector<8x1xf32>
    %44 = vector.broadcast %43 : vector<8x1xf32> to vector<8x8xf32>
    %45 = arith.mulf %40, %44 : vector<8x8xf32>
    %46 = arith.truncf %45 : vector<8x8xf32> to vector<8x8xbf16>
    %47 = arith.index_cast %arg2 : i32 to index
    %c0_23 = arith.constant 0 : index
    %c0_24 = arith.constant 0 : index
    %48 = vector.load %arg22[%47, %c0_23, %c0_24] : memref<2x8x16xbf16, #tpu.memory_space<vmem>>, vector<1x8x16xbf16>
    %49 = vector.shape_cast %48 : vector<1x8x16xbf16> to vector<8x16xbf16>
    %cst_25 = arith.constant dense<0.000000e+00> : vector<8x16xf32>
    %50 = tpu.matmul %46, %49, %cst_25 {dimension_numbers = #tpu.dot_dimension_numbers<[1], [0], [0], [1], [0, 0, 1, 1], [], []>} : vector<8x8xbf16>, vector<8x16xbf16>, vector<8x16xf32> -> vector<8x16xf32>
    %c0_26 = arith.constant 0 : index
    %c0_27 = arith.constant 0 : index
    %51 = vector.load %arg19[%c0_26, %c0_27] : memref<8x32xf32, #tpu.memory_space<vmem>>, vector<8x32xf32>
    %52 = arith.truncf %50 : vector<8x16xf32> to vector<8x16xbf16>
    %53 = arith.index_cast %arg2 : i32 to index
    %c0_28 = arith.constant 0 : index
    %c0_29 = arith.constant 0 : index
    %54 = vector.load %arg10[%53, %c0_28, %c0_29] : memref<2x16x32xbf16, #tpu.memory_space<vmem>>, vector<1x16x32xbf16>
    %55 = vector.shape_cast %54 : vector<1x16x32xbf16> to vector<16x32xbf16>
    %cst_30 = arith.constant dense<0.000000e+00> : vector<8x32xf32>
    %56 = tpu.matmul %52, %55, %cst_30 {dimension_numbers = #tpu.dot_dimension_numbers<[1], [0], [0], [1], [0, 0, 1, 1], [], []>} : vector<8x16xbf16>, vector<16x32xbf16>, vector<8x32xf32> -> vector<8x32xf32>
    %57 = arith.addf %51, %56 : vector<8x32xf32>
    %c0_31 = arith.constant 0 : index
    %c0_32 = arith.constant 0 : index
    %58 = vector.load %arg19[%c0_31, %c0_32] : memref<8x32xf32, #tpu.memory_space<vmem>>, vector<8x32xf32>
    tpu.vector_store %arg19[%c0_31, %c0_32], %57 {strides = array<i32>} : memref<8x32xf32, #tpu.memory_space<vmem>>, vector<8x32xf32>,
    %c1_i32 = arith.constant 1 : i32
    %59 = arith.cmpi eq, %arg2, %c1_i32 : i32
    %60 = arith.extui %59 : i1 to i32
    %c0_i32_33 = arith.constant 0 : i32
    %61 = arith.cmpi ne, %60, %c0_i32_33 : i32
    scf.if %61 {
      %62 = arith.extf %17 : vector<8x32xbf16> to vector<8x32xf32>
      %c0_34 = arith.constant 0 : index
      %c0_35 = arith.constant 0 : index
      %63 = vector.load %arg19[%c0_34, %c0_35] : memref<8x32xf32, #tpu.memory_space<vmem>>, vector<8x32xf32>
      %c0_36 = arith.constant 0 : index
      %c0_37 = arith.constant 0 : index
      %64 = vector.load %arg11[%c0_36, %c0_37] : memref<1x32xf32, #tpu.memory_space<vmem>>, vector<1x32xf32>
      %65 = vector.broadcast %64 : vector<1x32xf32> to vector<8x32xf32>
      %66 = arith.addf %63, %65 : vector<8x32xf32>
      %cst_38 = arith.constant dense<0.000000e+00> : vector<8xf32>
      %67 = vector.multi_reduction <add>, %66, %cst_38 [1] : vector<8x32xf32> to vector<8xf32>
      %68 = vector.shape_cast %67 : vector<8xf32> to vector<8x1xf32>
      %cst_39 = arith.constant 3.200000e+01 : f32
      %69 = vector.broadcast %cst_39 : f32 to vector<8x1xf32>
      %70 = arith.divf %68, %69 : vector<8x1xf32>
      %71 = vector.broadcast %70 : vector<8x1xf32> to vector<8x32xf32>
      %72 = arith.subf %66, %71 : vector<8x32xf32>
      %73 = arith.mulf %72, %72 : vector<8x32xf32>
      %cst_40 = arith.constant dense<0.000000e+00> : vector<8xf32>
      %74 = vector.multi_reduction <add>, %73, %cst_40 [1] : vector<8x32xf32> to vector<8xf32>
      %75 = vector.shape_cast %74 : vector<8xf32> to vector<8x1xf32>
      %cst_41 = arith.constant 3.200000e+01 : f32
      %76 = vector.broadcast %cst_41 : f32 to vector<8x1xf32>
      %77 = arith.divf %75, %76 : vector<8x1xf32>
      %cst_42 = arith.constant 9.99999974E-6 : f32
      %78 = vector.broadcast %cst_42 : f32 to vector<8x1xf32>
      %79 = arith.addf %77, %78 : vector<8x1xf32>
      %80 = math.rsqrt %79 : vector<8x1xf32>
      %81 = vector.broadcast %80 : vector<8x1xf32> to vector<8x32xf32>
      %82 = arith.mulf %72, %81 : vector<8x32xf32>
      %83 = vector.broadcast %0 : vector<1x32xf32> to vector<8x32xf32>
      %84 = arith.mulf %82, %83 : vector<8x32xf32>
      %85 = vector.broadcast %1 : vector<1x32xf32> to vector<8x32xf32>
      %86 = arith.addf %84, %85 : vector<8x32xf32>
      %87 = arith.addf %62, %86 : vector<8x32xf32>
      %88 = arith.truncf %87 : vector<8x32xf32> to vector<8x32xbf16>
      %c0_43 = arith.constant 0 : index
      %c0_44 = arith.constant 0 : index
      %89 = vector.load %arg14[%c0_43, %c0_44] : memref<32x32xbf16, #tpu.memory_space<vmem>>, vector<32x32xbf16>
      %cst_45 = arith.constant dense<0.000000e+00> : vector<8x32xf32>
      %90 = tpu.matmul %88, %89, %cst_45 {dimension_numbers = #tpu.dot_dimension_numbers<[1], [0], [0], [1], [0, 0, 1, 1], [], []>} : vector<8x32xbf16>, vector<32x32xbf16>, vector<8x32xf32> -> vector<8x32xf32>
      %c0_46 = arith.constant 0 : index
      %c0_47 = arith.constant 0 : index
      %91 = vector.load %arg15[%c0_46, %c0_47] : memref<1x32xf32, #tpu.memory_space<vmem>>, vector<1x32xf32>
      %92 = vector.broadcast %91 : vector<1x32xf32> to vector<8x32xf32>
      %93 = arith.addf %90, %92 : vector<8x32xf32>
      %cst_48 = arith.constant 0.000000e+00 : f32
      %94 = vector.broadcast %cst_48 : f32 to vector<8x32xf32>
      %95 = arith.maximumf %93, %94 : vector<8x32xf32>
      %96 = arith.truncf %95 : vector<8x32xf32> to vector<8x32xbf16>
      %c0_49 = arith.constant 0 : index
      %c0_50 = arith.constant 0 : index
      %97 = vector.load %arg16[%c0_49, %c0_50] : memref<32x32xbf16, #tpu.memory_space<vmem>>, vector<32x32xbf16>
      %cst_51 = arith.constant dense<0.000000e+00> : vector<8x32xf32>
      %98 = tpu.matmul %96, %97, %cst_51 {dimension_numbers = #tpu.dot_dimension_numbers<[1], [0], [0], [1], [0, 0, 1, 1], [], []>} : vector<8x32xbf16>, vector<32x32xbf16>, vector<8x32xf32> -> vector<8x32xf32>
      %c0_52 = arith.constant 0 : index
      %c0_53 = arith.constant 0 : index
      %99 = vector.load %arg17[%c0_52, %c0_53] : memref<1x32xf32, #tpu.memory_space<vmem>>, vector<1x32xf32>
      %100 = vector.broadcast %99 : vector<1x32xf32> to vector<8x32xf32>
      %101 = arith.addf %98, %100 : vector<8x32xf32>
      %cst_54 = arith.constant dense<0.000000e+00> : vector<8xf32>
      %102 = vector.multi_reduction <add>, %101, %cst_54 [1] : vector<8x32xf32> to vector<8xf32>
      %103 = vector.shape_cast %102 : vector<8xf32> to vector<8x1xf32>
      %cst_55 = arith.constant 3.200000e+01 : f32
      %104 = vector.broadcast %cst_55 : f32 to vector<8x1xf32>
      %105 = arith.divf %103, %104 : vector<8x1xf32>
      %106 = vector.broadcast %105 : vector<8x1xf32> to vector<8x32xf32>
      %107 = arith.subf %101, %106 : vector<8x32xf32>
      %108 = arith.mulf %107, %107 : vector<8x32xf32>
      %cst_56 = arith.constant dense<0.000000e+00> : vector<8xf32>
      %109 = vector.multi_reduction <add>, %108, %cst_56 [1] : vector<8x32xf32> to vector<8xf32>
      %110 = vector.shape_cast %109 : vector<8xf32> to vector<8x1xf32>
      %cst_57 = arith.constant 3.200000e+01 : f32
      %111 = vector.broadcast %cst_57 : f32 to vector<8x1xf32>
      %112 = arith.divf %110, %111 : vector<8x1xf32>
      %cst_58 = arith.constant 9.99999974E-6 : f32
      %113 = vector.broadcast %cst_58 : f32 to vector<8x1xf32>
      %114 = arith.addf %112, %113 : vector<8x1xf32>
      %115 = math.rsqrt %114 : vector<8x1xf32>
      %116 = vector.broadcast %115 : vector<8x1xf32> to vector<8x32xf32>
      %117 = arith.mulf %107, %116 : vector<8x32xf32>
      %118 = vector.broadcast %0 : vector<1x32xf32> to vector<8x32xf32>
      %119 = arith.mulf %117, %118 : vector<8x32xf32>
      %120 = vector.broadcast %1 : vector<1x32xf32> to vector<8x32xf32>
      %121 = arith.addf %119, %120 : vector<8x32xf32>
      %122 = arith.addf %87, %121 : vector<8x32xf32>
      %c0_59 = arith.constant 0 : index
      %c0_60 = arith.constant 0 : index
      %c0_61 = arith.constant 0 : index
      %123 = vector.load %arg18[%c0_59, %c0_60, %c0_61] : memref<1x8x32xf32, #tpu.memory_space<vmem>>, vector<1x8x32xf32>
      %124 = vector.shape_cast %123 : vector<1x8x32xf32> to vector<8x32xf32>
      %125 = vector.shape_cast %122 : vector<8x32xf32> to vector<1x8x32xf32>
      tpu.vector_store %arg18[%c0_59, %c0_60, %c0_61], %125 {strides = array<i32>} : memref<1x8x32xf32, #tpu.memory_space<vmem>>, vector<1x8x32xf32>,
    } else {
    }
    return
  }
  func.func @transform_0(%arg0: i32, %arg1: i32, %arg2: i32) -> (i32, i32, i32) {
    %c0_i32 = arith.constant 0 : i32
    %c0_i32_0 = arith.constant 0 : i32
    %c0_i32_1 = arith.constant 0 : i32
    return %arg0, %c0_i32, %c0_i32_0 : i32, i32, i32
  }
  func.func @transform_1(%arg0: i32, %arg1: i32, %arg2: i32) -> (i32, i32, i32) {
    %c0_i32 = arith.constant 0 : i32
    %c0_i32_0 = arith.constant 0 : i32
    %c0_i32_1 = arith.constant 0 : i32
    %c0_i32_2 = arith.constant 0 : i32
    return %c0_i32, %c0_i32_0, %c0_i32_1 : i32, i32, i32
  }
  func.func @transform_2(%arg0: i32, %arg1: i32, %arg2: i32) -> (i32, i32, i32) {
    %c0_i32 = arith.constant 0 : i32
    %c0_i32_0 = arith.constant 0 : i32
    %c0_i32_1 = arith.constant 0 : i32
    %c0_i32_2 = arith.constant 0 : i32
    return %c0_i32, %c0_i32_0, %c0_i32_1 : i32, i32, i32
  }
  func.func @transform_3(%arg0: i32, %arg1: i32, %arg2: i32) -> (i32, i32, i32) {
    %c0_i32 = arith.constant 0 : i32
    %c0_i32_0 = arith.constant 0 : i32
    %c0_i32_1 = arith.constant 0 : i32
    %c0_i32_2 = arith.constant 0 : i32
    return %c0_i32, %c0_i32_0, %c0_i32_1 : i32, i32, i32
  }
  func.func @transform_4(%arg0: i32, %arg1: i32, %arg2: i32) -> (i32, i32, i32) {
    %c0_i32 = arith.constant 0 : i32
    %c0_i32_0 = arith.constant 0 : i32
    %c0_i32_1 = arith.constant 0 : i32
    %c0_i32_2 = arith.constant 0 : i32
    return %c0_i32, %c0_i32_0, %c0_i32_1 : i32, i32, i32
  }
  func.func @transform_5(%arg0: i32, %arg1: i32, %arg2: i32) -> (i32, i32, i32) {
    %c0_i32 = arith.constant 0 : i32
    %c0_i32_0 = arith.constant 0 : i32
    %c0_i32_1 = arith.constant 0 : i32
    %c0_i32_2 = arith.constant 0 : i32
    return %c0_i32, %c0_i32_0, %c0_i32_1 : i32, i32, i32
  }
  func.func @transform_6(%arg0: i32, %arg1: i32, %arg2: i32) -> (i32, i32, i32) {
    %c0_i32 = arith.constant 0 : i32
    %c0_i32_0 = arith.constant 0 : i32
    %c0_i32_1 = arith.constant 0 : i32
    %c0_i32_2 = arith.constant 0 : i32
    return %c0_i32, %c0_i32_0, %c0_i32_1 : i32, i32, i32
  }
  func.func @transform_7(%arg0: i32, %arg1: i32, %arg2: i32) -> (i32, i32, i32) {
    %c0_i32 = arith.constant 0 : i32
    %c0_i32_0 = arith.constant 0 : i32
    %c0_i32_1 = arith.constant 0 : i32
    %c0_i32_2 = arith.constant 0 : i32
    return %c0_i32, %c0_i32_0, %c0_i32_1 : i32, i32, i32
  }
  func.func @transform_8(%arg0: i32, %arg1: i32, %arg2: i32) -> (i32, i32) {
    %c0_i32 = arith.constant 0 : i32
    %c0_i32_0 = arith.constant 0 : i32
    %c0_i32_1 = arith.constant 0 : i32
    return %c0_i32, %c0_i32_0 : i32, i32
  }
  func.func @transform_9(%arg0: i32, %arg1: i32, %arg2: i32) -> (i32, i32) {
    %c0_i32 = arith.constant 0 : i32
    %c0_i32_0 = arith.constant 0 : i32
    %c0_i32_1 = arith.constant 0 : i32
    return %c0_i32, %c0_i32_0 : i32, i32
  }
  func.func @transform_10(%arg0: i32, %arg1: i32, %arg2: i32) -> (i32, i32) {
    %c0_i32 = arith.constant 0 : i32
    %c0_i32_0 = arith.constant 0 : i32
    %c0_i32_1 = arith.constant 0 : i32
    return %c0_i32, %c0_i32_0 : i32, i32
  }
  func.func @transform_11(%arg0: i32, %arg1: i32, %arg2: i32) -> (i32, i32) {
    %c0_i32 = arith.constant 0 : i32
    %c0_i32_0 = arith.constant 0 : i32
    %c0_i32_1 = arith.constant 0 : i32
    return %c0_i32, %c0_i32_0 : i32, i32
  }
  func.func @transform_12(%arg0: i32, %arg1: i32, %arg2: i32) -> (i32, i32) {
    %c0_i32 = arith.constant 0 : i32
    %c0_i32_0 = arith.constant 0 : i32
    %c0_i32_1 = arith.constant 0 : i32
    return %c0_i32, %c0_i32_0 : i32, i32
  }
  func.func @transform_13(%arg0: i32, %arg1: i32, %arg2: i32) -> (i32, i32) {
    %c0_i32 = arith.constant 0 : i32
    %c0_i32_0 = arith.constant 0 : i32
    %c0_i32_1 = arith.constant 0 : i32
    return %c0_i32, %c0_i32_0 : i32, i32
  }
  func.func @transform_14(%arg0: i32, %arg1: i32, %arg2: i32) -> (i32, i32) {
    %c0_i32 = arith.constant 0 : i32
    %c0_i32_0 = arith.constant 0 : i32
    %c0_i32_1 = arith.constant 0 : i32
    return %c0_i32, %c0_i32_0 : i32, i32
  }
  func.func @transform_15(%arg0: i32, %arg1: i32, %arg2: i32) -> (i32, i32, i32) {
    %c0_i32 = arith.constant 0 : i32
    %c0_i32_0 = arith.constant 0 : i32
    return %arg0, %arg1, %c0_i32 : i32, i32, i32
  }
}

module attributes {stable_mosaic.version = 11 : i64} {
  func.func @_selfattn_block_kernel(%arg0: i32, %arg1: i32, %arg2: i32, %arg3: memref<1x8x32xbf16, #tpu.memory_space<vmem>>, %arg4: memref<2x32x16xbf16, #tpu.memory_space<vmem>>, %arg5: memref<2x1x16xf32, #tpu.memory_space<vmem>>, %arg6: memref<2x32x16xbf16, #tpu.memory_space<vmem>>, %arg7: memref<2x1x16xf32, #tpu.memory_space<vmem>>, %arg8: memref<2x32x16xbf16, #tpu.memory_space<vmem>>, %arg9: memref<2x1x16xf32, #tpu.memory_space<vmem>>, %arg10: memref<2x16x32xbf16, #tpu.memory_space<vmem>>, %arg11: memref<1x32xf32, #tpu.memory_space<vmem>>, %arg12: memref<1x32xf32, #tpu.memory_space<vmem>>, %arg13: memref<1x32xf32, #tpu.memory_space<vmem>>, %arg14: memref<32x32xbf16, #tpu.memory_space<vmem>>, %arg15: memref<1x32xf32, #tpu.memory_space<vmem>>, %arg16: memref<32x32xbf16, #tpu.memory_space<vmem>>, %arg17: memref<1x32xf32, #tpu.memory_space<vmem>>, %arg18: memref<1x8x32xf32, #tpu.memory_space<vmem>>, %arg19: memref<8x32xf32, #tpu.memory_space<vmem>>, %arg20: memref<8x32xbf16, #tpu.memory_space<vmem>>, %arg21: memref<2x8x16xbf16, #tpu.memory_space<vmem>>, %arg22: memref<2x8x16xbf16, #tpu.memory_space<vmem>>, %arg23: memref<8x8xf32, #tpu.memory_space<vmem>>) attributes {dimension_semantics = [#tpu.dimension_semantics<parallel>, #tpu.dimension_semantics<arbitrary>, #tpu.dimension_semantics<arbitrary>], iteration_bounds = array<i64: 2, 1, 2>, scalar_prefetch = 0 : i64, scratch_operands = 5 : i64, tpu.core_type = #tpu.core_type<tc>, window_params = [{transform_indices = @transform_0, window_bounds = array<i64: 1, 8, 32>}, {pipeline_mode = #tpu.pipeline_mode<synchronous>, transform_indices = @transform_1, window_bounds = array<i64: 2, 32, 16>}, {pipeline_mode = #tpu.pipeline_mode<synchronous>, transform_indices = @transform_2, window_bounds = array<i64: 2, 1, 16>}, {pipeline_mode = #tpu.pipeline_mode<synchronous>, transform_indices = @transform_3, window_bounds = array<i64: 2, 32, 16>}, {pipeline_mode = #tpu.pipeline_mode<synchronous>, transform_indices = @transform_4, window_bounds = array<i64: 2, 1, 16>}, {pipeline_mode = #tpu.pipeline_mode<synchronous>, transform_indices = @transform_5, window_bounds = array<i64: 2, 32, 16>}, {pipeline_mode = #tpu.pipeline_mode<synchronous>, transform_indices = @transform_6, window_bounds = array<i64: 2, 1, 16>}, {pipeline_mode = #tpu.pipeline_mode<synchronous>, transform_indices = @transform_7, window_bounds = array<i64: 2, 16, 32>}, {pipeline_mode = #tpu.pipeline_mode<synchronous>, transform_indices = @transform_8, window_bounds = array<i64: 1, 32>}, {pipeline_mode = #tpu.pipeline_mode<synchronous>, transform_indices = @transform_9, window_bounds = array<i64: 1, 32>}, {pipeline_mode = #tpu.pipeline_mode<synchronous>, transform_indices = @transform_10, window_bounds = array<i64: 1, 32>}, {pipeline_mode = #tpu.pipeline_mode<synchronous>, transform_indices = @transform_11, window_bounds = array<i64: 32, 32>}, {pipeline_mode = #tpu.pipeline_mode<synchronous>, transform_indices = @transform_12, window_bounds = array<i64: 1, 32>}, {pipeline_mode = #tpu.pipeline_mode<synchronous>, transform_indices = @transform_13, window_bounds = array<i64: 32, 32>}, {pipeline_mode = #tpu.pipeline_mode<synchronous>, transform_indices = @transform_14, window_bounds = array<i64: 1, 32>}, {transform_indices = @transform_15, window_bounds = array<i64: 1, 8, 32>}]} {
    %c0 = arith.constant 0 : index
    %c0_0 = arith.constant 0 : index
    %0 = vector.load %arg12[%c0, %c0_0] : memref<1x32xf32, #tpu.memory_space<vmem>>, vector<1x32xf32>
    %c0_1 = arith.constant 0 : index
    %c0_2 = arith.constant 0 : index
    %1 = vector.load %arg13[%c0_1, %c0_2] : memref<1x32xf32, #tpu.memory_space<vmem>>, vector<1x32xf32>
    %c0_i32 = arith.constant 0 : i32
    %2 = arith.cmpi eq, %arg1, %c0_i32 : i32
    %c0_i32_3 = arith.constant 0 : i32
    %3 = arith.cmpi eq, %arg2, %c0_i32_3 : i32
    %4 = arith.andi %2, %3 : i1
    %5 = arith.extui %4 : i1 to i32
    %c0_i32_4 = arith.constant 0 : i32
    %6 = arith.cmpi ne, %5, %c0_i32_4 : i32
    scf.if %6 {
      %c0_34 = arith.constant 0 : index
      %c0_35 = arith.constant 0 : index
      %c0_36 = arith.constant 0 : index
      %62 = vector.load %arg3[%c0_34, %c0_35, %c0_36] : memref<1x8x32xbf16, #tpu.memory_space<vmem>>, vector<1x8x32xbf16>
      %63 = vector.shape_cast %62 : vector<1x8x32xbf16> to vector<8x32xbf16>
      %64 = arith.extf %63 : vector<8x32xbf16> to vector<8x32xf32>
      %cst_37 = arith.constant dense<0.000000e+00> : vector<8xf32>
      %65 = vector.multi_reduction <add>, %64, %cst_37 [1] : vector<8x32xf32> to vector<8xf32>
      %66 = vector.shape_cast %65 : vector<8xf32> to vector<8x1xf32>
      %cst_38 = arith.constant 3.200000e+01 : f32
      %67 = vector.broadcast %cst_38 : f32 to vector<8x1xf32>
      %68 = arith.divf %66, %67 : vector<8x1xf32>
      %69 = vector.broadcast %68 : vector<8x1xf32> to vector<8x32xf32>
      %70 = arith.subf %64, %69 : vector<8x32xf32>
      %71 = arith.mulf %70, %70 : vector<8x32xf32>
      %cst_39 = arith.constant dense<0.000000e+00> : vector<8xf32>
      %72 = vector.multi_reduction <add>, %71, %cst_39 [1] : vector<8x32xf32> to vector<8xf32>
      %73 = vector.shape_cast %72 : vector<8xf32> to vector<8x1xf32>
      %cst_40 = arith.constant 3.200000e+01 : f32
      %74 = vector.broadcast %cst_40 : f32 to vector<8x1xf32>
      %75 = arith.divf %73, %74 : vector<8x1xf32>
      %cst_41 = arith.constant 9.99999974E-6 : f32
      %76 = vector.broadcast %cst_41 : f32 to vector<8x1xf32>
      %77 = arith.addf %75, %76 : vector<8x1xf32>
      %78 = math.rsqrt %77 : vector<8x1xf32>
      %79 = vector.broadcast %78 : vector<8x1xf32> to vector<8x32xf32>
      %80 = arith.mulf %70, %79 : vector<8x32xf32>
      %81 = vector.broadcast %0 : vector<1x32xf32> to vector<8x32xf32>
      %82 = arith.mulf %80, %81 : vector<8x32xf32>
      %83 = vector.broadcast %1 : vector<1x32xf32> to vector<8x32xf32>
      %84 = arith.addf %82, %83 : vector<8x32xf32>
      %85 = arith.truncf %84 : vector<8x32xf32> to vector<8x32xbf16>
      %c0_42 = arith.constant 0 : index
      %c0_43 = arith.constant 0 : index
      %86 = vector.load %arg20[%c0_42, %c0_43] : memref<8x32xbf16, #tpu.memory_space<vmem>>, vector<8x32xbf16>
      tpu.vector_store %arg20[%c0_42, %c0_43], %85 {strides = array<i32>} : memref<8x32xbf16, #tpu.memory_space<vmem>>, vector<8x32xbf16>,
    } else {
    }
    %c0_i32_5 = arith.constant 0 : i32
    %7 = arith.cmpi eq, %arg1, %c0_i32_5 : i32
    %8 = arith.extui %7 : i1 to i32
    %c0_i32_6 = arith.constant 0 : i32
    %9 = arith.cmpi ne, %8, %c0_i32_6 : i32
    scf.if %9 {
      %c0_34 = arith.constant 0 : index
      %c0_35 = arith.constant 0 : index
      %62 = vector.load %arg20[%c0_34, %c0_35] : memref<8x32xbf16, #tpu.memory_space<vmem>>, vector<8x32xbf16>
      %63 = arith.index_cast %arg2 : i32 to index
      %c0_36 = arith.constant 0 : index
      %c0_37 = arith.constant 0 : index
      %64 = vector.load %arg6[%63, %c0_36, %c0_37] : memref<2x32x16xbf16, #tpu.memory_space<vmem>>, vector<1x32x16xbf16>
      %65 = vector.shape_cast %64 : vector<1x32x16xbf16> to vector<32x16xbf16>
      %cst_38 = arith.constant dense<0.000000e+00> : vector<8x16xf32>
      %66 = tpu.matmul %62, %65, %cst_38 {dimension_numbers = #tpu.dot_dimension_numbers<[1], [0], [0], [1], [0, 0, 1, 1], [], []>} : vector<8x32xbf16>, vector<32x16xbf16>, vector<8x16xf32> -> vector<8x16xf32>
      %67 = arith.index_cast %arg2 : i32 to index
      %c0_39 = arith.constant 0 : index
      %c0_40 = arith.constant 0 : index
      %68 = vector.load %arg7[%67, %c0_39, %c0_40] : memref<2x1x16xf32, #tpu.memory_space<vmem>>, vector<1x1x16xf32>
      %69 = vector.shape_cast %68 : vector<1x1x16xf32> to vector<1x16xf32>
      %70 = vector.broadcast %69 : vector<1x16xf32> to vector<8x16xf32>
      %71 = arith.addf %66, %70 : vector<8x16xf32>
      %c0_41 = arith.constant 0 : index
      %c0_42 = arith.constant 0 : index
      %c0_43 = arith.constant 0 : index
      %72 = vector.load %arg3[%c0_41, %c0_42, %c0_43] : memref<1x8x32xbf16, #tpu.memory_space<vmem>>, vector<1x8x32xbf16>
      %73 = vector.shape_cast %72 : vector<1x8x32xbf16> to vector<8x32xbf16>
      %74 = arith.index_cast %arg2 : i32 to index
      %c0_44 = arith.constant 0 : index
      %c0_45 = arith.constant 0 : index
      %75 = vector.load %arg8[%74, %c0_44, %c0_45] : memref<2x32x16xbf16, #tpu.memory_space<vmem>>, vector<1x32x16xbf16>
      %76 = vector.shape_cast %75 : vector<1x32x16xbf16> to vector<32x16xbf16>
      %cst_46 = arith.constant dense<0.000000e+00> : vector<8x16xf32>
      %77 = tpu.matmul %73, %76, %cst_46 {dimension_numbers = #tpu.dot_dimension_numbers<[1], [0], [0], [1], [0, 0, 1, 1], [], []>} : vector<8x32xbf16>, vector<32x16xbf16>, vector<8x16xf32> -> vector<8x16xf32>
      %78 = arith.index_cast %arg2 : i32 to index
      %c0_47 = arith.constant 0 : index
      %c0_48 = arith.constant 0 : index
      %79 = vector.load %arg9[%78, %c0_47, %c0_48] : memref<2x1x16xf32, #tpu.memory_space<vmem>>, vector<1x1x16xf32>
      %80 = vector.shape_cast %79 : vector<1x1x16xf32> to vector<1x16xf32>
      %81 = vector.broadcast %80 : vector<1x16xf32> to vector<8x16xf32>
      %82 = arith.addf %77, %81 : vector<8x16xf32>
      %83 = arith.truncf %71 : vector<8x16xf32> to vector<8x16xbf16>
      %84 = arith.index_cast %arg2 : i32 to index
      %c0_49 = arith.constant 0 : index
      %c0_50 = arith.constant 0 : index
      %85 = vector.load %arg21[%84, %c0_49, %c0_50] : memref<2x8x16xbf16, #tpu.memory_space<vmem>>, vector<1x8x16xbf16>
      %86 = vector.shape_cast %85 : vector<1x8x16xbf16> to vector<8x16xbf16>
      %87 = vector.shape_cast %83 : vector<8x16xbf16> to vector<1x8x16xbf16>
      tpu.vector_store %arg21[%84, %c0_49, %c0_50], %87 {strides = array<i32>} : memref<2x8x16xbf16, #tpu.memory_space<vmem>>, vector<1x8x16xbf16>,
      %88 = arith.truncf %82 : vector<8x16xf32> to vector<8x16xbf16>
      %89 = arith.index_cast %arg2 : i32 to index
      %c0_51 = arith.constant 0 : index
      %c0_52 = arith.constant 0 : index
      %90 = vector.load %arg22[%89, %c0_51, %c0_52] : memref<2x8x16xbf16, #tpu.memory_space<vmem>>, vector<1x8x16xbf16>
      %91 = vector.shape_cast %90 : vector<1x8x16xbf16> to vector<8x16xbf16>
      %92 = vector.shape_cast %88 : vector<8x16xbf16> to vector<1x8x16xbf16>
      tpu.vector_store %arg22[%89, %c0_51, %c0_52], %92 {strides = array<i32>} : memref<2x8x16xbf16, #tpu.memory_space<vmem>>, vector<1x8x16xbf16>,
    } else {
    }
    %c0_i32_7 = arith.constant 0 : i32
    %10 = arith.cmpi eq, %arg2, %c0_i32_7 : i32
    %11 = arith.extui %10 : i1 to i32
    %c0_i32_8 = arith.constant 0 : i32
    %12 = arith.cmpi ne, %11, %c0_i32_8 : i32
    scf.if %12 {
      %cst_34 = arith.constant 0.000000e+00 : f32
      %62 = vector.broadcast %cst_34 : f32 to vector<8x32xf32>
      %c0_35 = arith.constant 0 : index
      %c0_36 = arith.constant 0 : index
      %63 = vector.load %arg19[%c0_35, %c0_36] : memref<8x32xf32, #tpu.memory_space<vmem>>, vector<8x32xf32>
      tpu.vector_store %arg19[%c0_35, %c0_36], %62 {strides = array<i32>} : memref<8x32xf32, #tpu.memory_space<vmem>>, vector<8x32xf32>,
      %64 = tpu.iota {dimensions = array<i32: 0>} : vector<8x8xi32>
      %c8_i32_37 = arith.constant 8 : i32
      %65 = arith.muli %arg1, %c8_i32_37 : i32
      %66 = vector.broadcast %65 : i32 to vector<8x8xi32>
      %67 = arith.addi %64, %66 : vector<8x8xi32>
      %68 = tpu.iota {dimensions = array<i32: 1>} : vector<8x8xi32>
      %69 = arith.cmpi sle, %68, %67 : vector<8x8xi32>
      %cst_38 = arith.constant 0.000000e+00 : f32
      %cst_39 = arith.constant -1.000000e+30 : f32
      %70 = vector.broadcast %cst_38 : f32 to vector<8x8xf32>
      %71 = vector.broadcast %cst_39 : f32 to vector<8x8xf32>
      %72 = arith.select %69, %70, %71 : vector<8x8xi1>, vector<8x8xf32>
      %c0_40 = arith.constant 0 : index
      %c0_41 = arith.constant 0 : index
      %73 = vector.load %arg23[%c0_40, %c0_41] : memref<8x8xf32, #tpu.memory_space<vmem>>, vector<8x8xf32>
      tpu.vector_store %arg23[%c0_40, %c0_41], %72 {strides = array<i32>} : memref<8x8xf32, #tpu.memory_space<vmem>>, vector<8x8xf32>,
    } else {
    }
    %c8_i32 = arith.constant 8 : i32
    %13 = arith.muli %arg1, %c8_i32 : i32
    %14 = tpu.assume_multiple %13, 8 : i32
    %c0_9 = arith.constant 0 : index
    %15 = arith.index_cast %14 : i32 to index
    %c0_10 = arith.constant 0 : index
    %16 = vector.load %arg3[%c0_9, %15, %c0_10] : memref<1x8x32xbf16, #tpu.memory_space<vmem>>, vector<1x8x32xbf16>
    %17 = vector.shape_cast %16 : vector<1x8x32xbf16> to vector<8x32xbf16>
    %18 = arith.index_cast %arg2 : i32 to index
    %c0_11 = arith.constant 0 : index
    %c0_12 = arith.constant 0 : index
    %19 = vector.load %arg4[%18, %c0_11, %c0_12] : memref<2x32x16xbf16, #tpu.memory_space<vmem>>, vector<1x32x16xbf16>
    %20 = vector.shape_cast %19 : vector<1x32x16xbf16> to vector<32x16xbf16>
    %cst = arith.constant dense<0.000000e+00> : vector<8x16xf32>
    %21 = tpu.matmul %17, %20, %cst {dimension_numbers = #tpu.dot_dimension_numbers<[1], [0], [0], [1], [0, 0, 1, 1], [], []>} : vector<8x32xbf16>, vector<32x16xbf16>, vector<8x16xf32> -> vector<8x16xf32>
    %22 = arith.index_cast %arg2 : i32 to index
    %c0_13 = arith.constant 0 : index
    %c0_14 = arith.constant 0 : index
    %23 = vector.load %arg5[%22, %c0_13, %c0_14] : memref<2x1x16xf32, #tpu.memory_space<vmem>>, vector<1x1x16xf32>
    %24 = vector.shape_cast %23 : vector<1x1x16xf32> to vector<1x16xf32>
    %25 = vector.broadcast %24 : vector<1x16xf32> to vector<8x16xf32>
    %26 = arith.addf %21, %25 : vector<8x16xf32>
    %cst_15 = arith.constant 2.500000e-01 : f32
    %27 = vector.broadcast %cst_15 : f32 to vector<8x16xf32>
    %28 = arith.mulf %26, %27 : vector<8x16xf32>
    %29 = arith.truncf %28 : vector<8x16xf32> to vector<8x16xbf16>
    %30 = arith.index_cast %arg2 : i32 to index
    %c0_16 = arith.constant 0 : index
    %c0_17 = arith.constant 0 : index
    %31 = vector.load %arg21[%30, %c0_16, %c0_17] : memref<2x8x16xbf16, #tpu.memory_space<vmem>>, vector<1x8x16xbf16>
    %32 = vector.shape_cast %31 : vector<1x8x16xbf16> to vector<8x16xbf16>
    %cst_18 = arith.constant dense<0.000000e+00> : vector<8x8xf32>
    %33 = tpu.matmul %29, %32, %cst_18 {dimension_numbers = #tpu.dot_dimension_numbers<[1], [1], [0], [0], [0, 0, 1, 0], [], []>} : vector<8x16xbf16>, vector<8x16xbf16>, vector<8x8xf32> -> vector<8x8xf32>
    %c0_19 = arith.constant 0 : index
    %c0_20 = arith.constant 0 : index
    %34 = vector.load %arg23[%c0_19, %c0_20] : memref<8x8xf32, #tpu.memory_space<vmem>>, vector<8x8xf32>
    %35 = arith.addf %33, %34 : vector<8x8xf32>
    %cst_21 = arith.constant dense<0xFF800000> : vector<8xf32>
    %36 = vector.multi_reduction <maximumf>, %35, %cst_21 [1] : vector<8x8xf32> to vector<8xf32>
    %37 = vector.shape_cast %36 : vector<8xf32> to vector<8x1xf32>
    %38 = vector.broadcast %37 : vector<8x1xf32> to vector<8x8xf32>
    %39 = arith.subf %35, %38 : vector<8x8xf32>
    %40 = math.exp %39 : vector<8x8xf32>
    %cst_22 = arith.constant dense<0.000000e+00> : vector<8xf32>
    %41 = vector.multi_reduction <add>, %40, %cst_22 [1] : vector<8x8xf32> to vector<8xf32>
    %42 = vector.shape_cast %41 : vector<8xf32> to vector<8x1xf32>
    %43 = tpu.reciprocal %42 {approx = true} : vector<8x1xf32> -> vector<8x1xf32>
    %44 = vector.broadcast %43 : vector<8x1xf32> to vector<8x8xf32>
    %45 = arith.mulf %40, %44 : vector<8x8xf32>
    %46 = arith.truncf %45 : vector<8x8xf32> to vector<8x8xbf16>
    %47 = arith.index_cast %arg2 : i32 to index
    %c0_23 = arith.constant 0 : index
    %c0_24 = arith.constant 0 : index
    %48 = vector.load %arg22[%47, %c0_23, %c0_24] : memref<2x8x16xbf16, #tpu.memory_space<vmem>>, vector<1x8x16xbf16>
    %49 = vector.shape_cast %48 : vector<1x8x16xbf16> to vector<8x16xbf16>
    %cst_25 = arith.constant dense<0.000000e+00> : vector<8x16xf32>
    %50 = tpu.matmul %46, %49, %cst_25 {dimension_numbers = #tpu.dot_dimension_numbers<[1], [0], [0], [1], [0, 0, 1, 1], [], []>} : vector<8x8xbf16>, vector<8x16xbf16>, vector<8x16xf32> -> vector<8x16xf32>
    %c0_26 = arith.constant 0 : index
    %c0_27 = arith.constant 0 : index
    %51 = vector.load %arg19[%c0_26, %c0_27] : memref<8x32xf32, #tpu.memory_space<vmem>>, vector<8x32xf32>
    %52 = arith.truncf %50 : vector<8x16xf32> to vector<8x16xbf16>
    %53 = arith.index_cast %arg2 : i32 to index
    %c0_28 = arith.constant 0 : index
    %c0_29 = arith.constant 0 : index
    %54 = vector.load %arg10[%53, %c0_28, %c0_29] : memref<2x16x32xbf16, #tpu.memory_space<vmem>>, vector<1x16x32xbf16>
    %55 = vector.shape_cast %54 : vector<1x16x32xbf16> to vector<16x32xbf16>
    %cst_30 = arith.constant dense<0.000000e+00> : vector<8x32xf32>
    %56 = tpu.matmul %52, %55, %cst_30 {dimension_numbers = #tpu.dot_dimension_numbers<[1], [0], [0], [1], [0, 0, 1, 1], [], []>} : vector<8x16xbf16>, vector<16x32xbf16>, vector<8x32xf32> -> vector<8x32xf32>
    %57 = arith.addf %51, %56 : vector<8x32xf32>
    %c0_31 = arith.constant 0 : index
    %c0_32 = arith.constant 0 : index
    %58 = vector.load %arg19[%c0_31, %c0_32] : memref<8x32xf32, #tpu.memory_space<vmem>>, vector<8x32xf32>
    tpu.vector_store %arg19[%c0_31, %c0_32], %57 {strides = array<i32>} : memref<8x32xf32, #tpu.memory_space<vmem>>, vector<8x32xf32>,
    %c1_i32 = arith.constant 1 : i32
    %59 = arith.cmpi eq, %arg2, %c1_i32 : i32
    %60 = arith.extui %59 : i1 to i32
    %c0_i32_33 = arith.constant 0 : i32
    %61 = arith.cmpi ne, %60, %c0_i32_33 : i32
    scf.if %61 {
      %62 = arith.extf %17 : vector<8x32xbf16> to vector<8x32xf32>
      %c0_34 = arith.constant 0 : index
      %c0_35 = arith.constant 0 : index
      %63 = vector.load %arg19[%c0_34, %c0_35] : memref<8x32xf32, #tpu.memory_space<vmem>>, vector<8x32xf32>
      %c0_36 = arith.constant 0 : index
      %c0_37 = arith.constant 0 : index
      %64 = vector.load %arg11[%c0_36, %c0_37] : memref<1x32xf32, #tpu.memory_space<vmem>>, vector<1x32xf32>
      %65 = vector.broadcast %64 : vector<1x32xf32> to vector<8x32xf32>
      %66 = arith.addf %63, %65 : vector<8x32xf32>
      %cst_38 = arith.constant dense<0.000000e+00> : vector<8xf32>
      %67 = vector.multi_reduction <add>, %66, %cst_38 [1] : vector<8x32xf32> to vector<8xf32>
      %68 = vector.shape_cast %67 : vector<8xf32> to vector<8x1xf32>
      %cst_39 = arith.constant 3.200000e+01 : f32
      %69 = vector.broadcast %cst_39 : f32 to vector<8x1xf32>
      %70 = arith.divf %68, %69 : vector<8x1xf32>
      %71 = vector.broadcast %70 : vector<8x1xf32> to vector<8x32xf32>
      %72 = arith.subf %66, %71 : vector<8x32xf32>
      %73 = arith.mulf %72, %72 : vector<8x32xf32>
      %cst_40 = arith.constant dense<0.000000e+00> : vector<8xf32>
      %74 = vector.multi_reduction <add>, %73, %cst_40 [1] : vector<8x32xf32> to vector<8xf32>
      %75 = vector.shape_cast %74 : vector<8xf32> to vector<8x1xf32>
      %cst_41 = arith.constant 3.200000e+01 : f32
      %76 = vector.broadcast %cst_41 : f32 to vector<8x1xf32>
      %77 = arith.divf %75, %76 : vector<8x1xf32>
      %cst_42 = arith.constant 9.99999974E-6 : f32
      %78 = vector.broadcast %cst_42 : f32 to vector<8x1xf32>
      %79 = arith.addf %77, %78 : vector<8x1xf32>
      %80 = math.rsqrt %79 : vector<8x1xf32>
      %81 = vector.broadcast %80 : vector<8x1xf32> to vector<8x32xf32>
      %82 = arith.mulf %72, %81 : vector<8x32xf32>
      %83 = vector.broadcast %0 : vector<1x32xf32> to vector<8x32xf32>
      %84 = arith.mulf %82, %83 : vector<8x32xf32>
      %85 = vector.broadcast %1 : vector<1x32xf32> to vector<8x32xf32>
      %86 = arith.addf %84, %85 : vector<8x32xf32>
      %87 = arith.addf %62, %86 : vector<8x32xf32>
      %88 = arith.truncf %87 : vector<8x32xf32> to vector<8x32xbf16>
      %c0_43 = arith.constant 0 : index
      %c0_44 = arith.constant 0 : index
      %89 = vector.load %arg14[%c0_43, %c0_44] : memref<32x32xbf16, #tpu.memory_space<vmem>>, vector<32x32xbf16>
      %cst_45 = arith.constant dense<0.000000e+00> : vector<8x32xf32>
      %90 = tpu.matmul %88, %89, %cst_45 {dimension_numbers = #tpu.dot_dimension_numbers<[1], [0], [0], [1], [0, 0, 1, 1], [], []>} : vector<8x32xbf16>, vector<32x32xbf16>, vector<8x32xf32> -> vector<8x32xf32>
      %c0_46 = arith.constant 0 : index
      %c0_47 = arith.constant 0 : index
      %91 = vector.load %arg15[%c0_46, %c0_47] : memref<1x32xf32, #tpu.memory_space<vmem>>, vector<1x32xf32>
      %92 = vector.broadcast %91 : vector<1x32xf32> to vector<8x32xf32>
      %93 = arith.addf %90, %92 : vector<8x32xf32>
      %cst_48 = arith.constant 0.000000e+00 : f32
      %94 = vector.broadcast %cst_48 : f32 to vector<8x32xf32>
      %95 = arith.maximumf %93, %94 : vector<8x32xf32>
      %96 = arith.truncf %95 : vector<8x32xf32> to vector<8x32xbf16>
      %c0_49 = arith.constant 0 : index
      %c0_50 = arith.constant 0 : index
      %97 = vector.load %arg16[%c0_49, %c0_50] : memref<32x32xbf16, #tpu.memory_space<vmem>>, vector<32x32xbf16>
      %cst_51 = arith.constant dense<0.000000e+00> : vector<8x32xf32>
      %98 = tpu.matmul %96, %97, %cst_51 {dimension_numbers = #tpu.dot_dimension_numbers<[1], [0], [0], [1], [0, 0, 1, 1], [], []>} : vector<8x32xbf16>, vector<32x32xbf16>, vector<8x32xf32> -> vector<8x32xf32>
      %c0_52 = arith.constant 0 : index
      %c0_53 = arith.constant 0 : index
      %99 = vector.load %arg17[%c0_52, %c0_53] : memref<1x32xf32, #tpu.memory_space<vmem>>, vector<1x32xf32>
      %100 = vector.broadcast %99 : vector<1x32xf32> to vector<8x32xf32>
      %101 = arith.addf %98, %100 : vector<8x32xf32>
      %cst_54 = arith.constant dense<0.000000e+00> : vector<8xf32>
      %102 = vector.multi_reduction <add>, %101, %cst_54 [1] : vector<8x32xf32> to vector<8xf32>
      %103 = vector.shape_cast %102 : vector<8xf32> to vector<8x1xf32>
      %cst_55 = arith.constant 3.200000e+01 : f32
      %104 = vector.broadcast %cst_55 : f32 to vector<8x1xf32>
      %105 = arith.divf %103, %104 : vector<8x1xf32>
      %106 = vector.broadcast %105 : vector<8x1xf32> to vector<8x32xf32>
      %107 = arith.subf %101, %106 : vector<8x32xf32>
      %108 = arith.mulf %107, %107 : vector<8x32xf32>
      %cst_56 = arith.constant dense<0.000000e+00> : vector<8xf32>
      %109 = vector.multi_reduction <add>, %108, %cst_56 [1] : vector<8x32xf32> to vector<8xf32>
      %110 = vector.shape_cast %109 : vector<8xf32> to vector<8x1xf32>
      %cst_57 = arith.constant 3.200000e+01 : f32
      %111 = vector.broadcast %cst_57 : f32 to vector<8x1xf32>
      %112 = arith.divf %110, %111 : vector<8x1xf32>
      %cst_58 = arith.constant 9.99999974E-6 : f32
      %113 = vector.broadcast %cst_58 : f32 to vector<8x1xf32>
      %114 = arith.addf %112, %113 : vector<8x1xf32>
      %115 = math.rsqrt %114 : vector<8x1xf32>
      %116 = vector.broadcast %115 : vector<8x1xf32> to vector<8x32xf32>
      %117 = arith.mulf %107, %116 : vector<8x32xf32>
      %118 = vector.broadcast %0 : vector<1x32xf32> to vector<8x32xf32>
      %119 = arith.mulf %117, %118 : vector<8x32xf32>
      %120 = vector.broadcast %1 : vector<1x32xf32> to vector<8x32xf32>
      %121 = arith.addf %119, %120 : vector<8x32xf32>
      %122 = arith.addf %87, %121 : vector<8x32xf32>
      %c0_59 = arith.constant 0 : index
      %c0_60 = arith.constant 0 : index
      %c0_61 = arith.constant 0 : index
      %123 = vector.load %arg18[%c0_59, %c0_60, %c0_61] : memref<1x8x32xf32, #tpu.memory_space<vmem>>, vector<1x8x32xf32>
      %124 = vector.shape_cast %123 : vector<1x8x32xf32> to vector<8x32xf32>
      %125 = vector.shape_cast %122 : vector<8x32xf32> to vector<1x8x32xf32>
      tpu.vector_store %arg18[%c0_59, %c0_60, %c0_61], %125 {strides = array<i32>} : memref<1x8x32xf32, #tpu.memory_space<vmem>>, vector<1x8x32xf32>,
    } else {
    }
    return
  }
  func.func @transform_0(%arg0: i32, %arg1: i32, %arg2: i32) -> (i32, i32, i32) {
    %c0_i32 = arith.constant 0 : i32
    %c0_i32_0 = arith.constant 0 : i32
    %c0_i32_1 = arith.constant 0 : i32
    return %arg0, %c0_i32, %c0_i32_0 : i32, i32, i32
  }
  func.func @transform_1(%arg0: i32, %arg1: i32, %arg2: i32) -> (i32, i32, i32) {
    %c0_i32 = arith.constant 0 : i32
    %c0_i32_0 = arith.constant 0 : i32
    %c0_i32_1 = arith.constant 0 : i32
    %c0_i32_2 = arith.constant 0 : i32
    return %c0_i32, %c0_i32_0, %c0_i32_1 : i32, i32, i32
  }
  func.func @transform_2(%arg0: i32, %arg1: i32, %arg2: i32) -> (i32, i32, i32) {
    %c0_i32 = arith.constant 0 : i32
    %c0_i32_0 = arith.constant 0 : i32
    %c0_i32_1 = arith.constant 0 : i32
    %c0_i32_2 = arith.constant 0 : i32
    return %c0_i32, %c0_i32_0, %c0_i32_1 : i32, i32, i32
  }
  func.func @transform_3(%arg0: i32, %arg1: i32, %arg2: i32) -> (i32, i32, i32) {
    %c0_i32 = arith.constant 0 : i32
    %c0_i32_0 = arith.constant 0 : i32
    %c0_i32_1 = arith.constant 0 : i32
    %c0_i32_2 = arith.constant 0 : i32
    return %c0_i32, %c0_i32_0, %c0_i32_1 : i32, i32, i32
  }
  func.func @transform_4(%arg0: i32, %arg1: i32, %arg2: i32) -> (i32, i32, i32) {
    %c0_i32 = arith.constant 0 : i32
    %c0_i32_0 = arith.constant 0 : i32
    %c0_i32_1 = arith.constant 0 : i32
    %c0_i32_2 = arith.constant 0 : i32
    return %c0_i32, %c0_i32_0, %c0_i32_1 : i32, i32, i32
  }
  func.func @transform_5(%arg0: i32, %arg1: i32, %arg2: i32) -> (i32, i32, i32) {
    %c0_i32 = arith.constant 0 : i32
    %c0_i32_0 = arith.constant 0 : i32
    %c0_i32_1 = arith.constant 0 : i32
    %c0_i32_2 = arith.constant 0 : i32
    return %c0_i32, %c0_i32_0, %c0_i32_1 : i32, i32, i32
  }
  func.func @transform_6(%arg0: i32, %arg1: i32, %arg2: i32) -> (i32, i32, i32) {
    %c0_i32 = arith.constant 0 : i32
    %c0_i32_0 = arith.constant 0 : i32
    %c0_i32_1 = arith.constant 0 : i32
    %c0_i32_2 = arith.constant 0 : i32
    return %c0_i32, %c0_i32_0, %c0_i32_1 : i32, i32, i32
  }
  func.func @transform_7(%arg0: i32, %arg1: i32, %arg2: i32) -> (i32, i32, i32) {
    %c0_i32 = arith.constant 0 : i32
    %c0_i32_0 = arith.constant 0 : i32
    %c0_i32_1 = arith.constant 0 : i32
    %c0_i32_2 = arith.constant 0 : i32
    return %c0_i32, %c0_i32_0, %c0_i32_1 : i32, i32, i32
  }
  func.func @transform_8(%arg0: i32, %arg1: i32, %arg2: i32) -> (i32, i32) {
    %c0_i32 = arith.constant 0 : i32
    %c0_i32_0 = arith.constant 0 : i32
    %c0_i32_1 = arith.constant 0 : i32
    return %c0_i32, %c0_i32_0 : i32, i32
  }
  func.func @transform_9(%arg0: i32, %arg1: i32, %arg2: i32) -> (i32, i32) {
    %c0_i32 = arith.constant 0 : i32
    %c0_i32_0 = arith.constant 0 : i32
    %c0_i32_1 = arith.constant 0 : i32
    return %c0_i32, %c0_i32_0 : i32, i32
  }
  func.func @transform_10(%arg0: i32, %arg1: i32, %arg2: i32) -> (i32, i32) {
    %c0_i32 = arith.constant 0 : i32
    %c0_i32_0 = arith.constant 0 : i32
    %c0_i32_1 = arith.constant 0 : i32
    return %c0_i32, %c0_i32_0 : i32, i32
  }
  func.func @transform_11(%arg0: i32, %arg1: i32, %arg2: i32) -> (i32, i32) {
    %c0_i32 = arith.constant 0 : i32
    %c0_i32_0 = arith.constant 0 : i32
    %c0_i32_1 = arith.constant 0 : i32
    return %c0_i32, %c0_i32_0 : i32, i32
  }
  func.func @transform_12(%arg0: i32, %arg1: i32, %arg2: i32) -> (i32, i32) {
    %c0_i32 = arith.constant 0 : i32
    %c0_i32_0 = arith.constant 0 : i32
    %c0_i32_1 = arith.constant 0 : i32
    return %c0_i32, %c0_i32_0 : i32, i32
  }
  func.func @transform_13(%arg0: i32, %arg1: i32, %arg2: i32) -> (i32, i32) {
    %c0_i32 = arith.constant 0 : i32
    %c0_i32_0 = arith.constant 0 : i32
    %c0_i32_1 = arith.constant 0 : i32
    return %c0_i32, %c0_i32_0 : i32, i32
  }
  func.func @transform_14(%arg0: i32, %arg1: i32, %arg2: i32) -> (i32, i32) {
    %c0_i32 = arith.constant 0 : i32
    %c0_i32_0 = arith.constant 0 : i32
    %c0_i32_1 = arith.constant 0 : i32
    return %c0_i32, %c0_i32_0 : i32, i32
  }
  func.func @transform_15(%arg0: i32, %arg1: i32, %arg2: i32) -> (i32, i32, i32) {
    %c0_i32 = arith.constant 0 : i32
    %c0_i32_0 = arith.constant 0 : i32
    return %arg0, %arg1, %c0_i32 : i32, i32, i32
  }
}

</mosaic_0001>

<bundles_post_ra>
// kernel: tpu_custom_call.1
= control target key start
LH: loop header
LB: loop body
LE: loop exit
PB: predicated region body
PF: predicated region fallthrough
CT: control target
= control target key end

     0   :  { %s1949_s0 = inlined_call_operand.vmem [shape: bf16[2,8,32], index: 0, kind: input, shape index: {}]   ;;  %s1950_s1 = inlined_call_operand.vmem [shape: bf16[2,32,16], index: 1, kind: input, shape index: {}]   ;;  %s1951_s2 = inlined_call_operand.vmem [shape: f32[2,1,16], index: 2, kind: input, shape index: {}]   ;;  %s1952_s3 = inlined_call_operand.vmem [shape: bf16[2,32,16], index: 3, kind: input, shape index: {}]   ;;  %s1953_s4 = inlined_call_operand.vmem [shape: f32[2,1,16], index: 4, kind: input, shape index: {}]   ;;  %s1954_s5 = inlined_call_operand.vmem [shape: bf16[2,32,16], index: 5, kind: input, shape index: {}]   ;;  %s1955_s6 = inlined_call_operand.vmem [shape: f32[2,1,16], index: 6, kind: input, shape index: {}]   ;;  %s1956_s7 = inlined_call_operand.vmem [shape: bf16[2,16,32], index: 7, kind: input, shape index: {}]   ;;  %s1957_s8 = inlined_call_operand.vmem [shape: f32[1,32], index: 8, kind: input, shape index: {}]   ;;  %s1958_s9 = inlined_call_operand.vmem [shape: f32[1,32], index: 9, kind: input, shape index: {}]   ;;  %s1959_s10 = inlined_call_operand.vmem [shape: f32[1,32], index: 10, kind: input, shape index: {}]   ;;  %s1960_s11 = inlined_call_operand.vmem [shape: bf16[32,32], index: 11, kind: input, shape index: {}]   ;;  %s1961_s12 = inlined_call_operand.vmem [shape: f32[1,32], index: 12, kind: input, shape index: {}]   ;;  %s1962_s13 = inlined_call_operand.vmem [shape: bf16[32,32], index: 13, kind: input, shape index: {}]   ;;  %s1963_s14 = inlined_call_operand.vmem [shape: f32[1,32], index: 14, kind: input, shape index: {}]   ;;  %s1964_s15 = inlined_call_operand.hbm [shape: f32[2,8,32], index: 15, kind: output, shape index: {}]  }
   0x1   :  { %1974 = sst [smem:[#allocation19_spill]] %s1949_s0 }
   0x2   :  { %20 = vsyncpa [#allocation8], 0 }
   0x3   :  { %22 = vsyncpa [#allocation8 + $0x1], 0  ;;  %s1693_s18 = smov 0   ;;  %s1695_s19 = smov 0  }
   0x4   :  { %s1697_s20 = smov 0   ;;  %s1699_s21 = smov 0  }
   0x5   :  { %s1701_s22 = smov 0   ;;  %s1703_s23 = smov 0  }
   0x6   :  { %s1705_s24 = smov 0   ;;  %s1707_s25 = smov 0  }
   0x7 LB: > { %1975 = sst [smem:[#allocation10_spill]] %s1576_s18  ;;  %s1280_s26 = sadd.s32 4294967295, %s1604_s25   ;;  %s1604_s25 = sphi %s1707_s25, %s28_s25   ;;  %s1600_s24 = sphi %s1705_s24, %s1998_s24   ;;  %s1596_s23 = sphi %s1703_s23, %s1997_s23   ;;  %s1592_s22 = sphi %s1701_s22, %s2001_s22   ;;  %s1588_s21 = sphi %s1699_s21, %s1995_s21   ;;  %s1584_s20 = sphi %s1697_s20, %s1994_s20   ;;  %s1580_s19 = sphi %s1695_s19, %s2000_s19   ;;  %s1576_s18 = sphi %s1693_s18, %s1999_s18  }
   0x8   : > { %1976 = sst [smem:[#allocation11_spill]] %s1584_s20  ;;  %s1281_s27 = sadd.s32 4294967294, %s1604_s25  }
   0x9   : > { %1977 = sst [smem:[#allocation12_spill]] %s1596_s23  ;;  %s40_s28 = sadd.s32 1, %s1596_s23 }
   0xa   : > { %1978 = sst [smem:[#allocation13_spill]] %s1600_s24  ;;  %p41_p0 = scmp.ge.s32.totalorder %s40_s28, 2 }
   0xb   : > { %1979 = sst [smem:[#allocation14_spill]] %s1604_s25  ;;  %s47_s29 = sadd.s32 1, %s1600_s24 }
   0xc   : > { %p386_p1 = scmp.ne.s32.totalorder %s1584_s20, %s1580_s19  ;;  %p387_p2 = scmp.eq.s32.totalorder %s1280_s26, 3 }
   0xd   : > { %s2003_s28 = smov (%p41_p0, %s40_s28), 0  ;;  %s2005_s29 = smov (!%p41_p0, %s47_s29), %s1600_s24 }
   0xe   : > { %1980 = sst [smem:[#allocation15_spill]] %s2003_s28  ;;  %p1742_p3 = por %p387_p2, %p386_p1 }
   0xf   : > { %p392_p4 = scmp.ne.s32.totalorder %s1580_s19, %s1576_s18  ;;  %p49_p5 = scmp.ge.s32.totalorder %s2005_s29, 2 }
  0x10   : > { %p393_p6 = scmp.eq.s32.totalorder %s1281_s27, 3  ;;  %p1284_p7 = scmp.ge.s32.totalorder %s1604_s25, 1 }
  0x11   : > { %p460_p8 = scmp.lt.s32.totalorder %s1604_s25, 5  ;;  %s2007_s29 = smov (%p49_p5, %s2005_s29), 0 }
  0x12   : > { %1982 = sst [smem:[#allocation16_spill]] %s2007_s29  ;;  %p1752_p9 = por %p393_p6, %p392_p4 }
  0x13   : > { %p461_p10 = pnand %p1284_p7, %p460_p8  ;;  %s371_s17 = ssub.s32 %s1600_s24, %s2007_s29 }
  0x14   : > { %s1983_s16 = scalar_select %p1752_p9, 1, 0 }
  0x15   : > { %s376_s26 = sadd.s32 1, %s1584_s20  ;;  %p374_p11 = scmp.eq.s32.totalorder %s371_s17, 0 }
  0x16   : > { %1984 = sst [smem:[#allocation17_spill]] %s1983_s16  ;;  %464 = sbr.rel (%p461_p10) target bundleno = 2723 (0xaa3), region = 80 }
  0x17   : > { %s1760_s28 = scalar_select %p374_p11, %s1584_s20, %s376_s26  }
  0x18   : > { %s1973_s27 = sand.u32 (!%p461_p10), 1, %s1580_s19   ;;  %p507_p12 = scmp.lt.s32.totalorder (!%p461_p10), %s1592_s22, 1 }
  0x19   : > { %1985 = sst [smem:[#allocation18_spill]] %s1760_s28  ;;  %s1776_s17 = sshll.u32 (!%p461_p10), %s1973_s27, 3 }
  0x1a   : > { %p515_p13 = scmp.eq.s32.totalorder (!%p461_p10), %s1588_s21, 0  ;;  %s1986_s0 = sld [smem:[#allocation19_spill]] (!%p461_p10) }
  0x1b   : > { %v1767_v0 = vld [vmem:[%s1958_s9] sm:$0x1]  ;;  %s508_s26 = scalar_select %p507_p12, %s1592_s22, 1  ;;  %vm522_vm0 = vcmask (%p515_p13), 261120   ;;  %v538_v13 = vlaneseq (%p515_p13)  ;;  %vm552_vm1 = vcmask (%p515_p13), 257024  }
  0x1c   : > { %v1772_v1 = vld [vmem:[%s1959_s10] sm:$0x1]  ;;  %519 = sbr.rel (!%p515_p13) target bundleno = 347 (0x15b), region = 84 }
  0x1d   : > { %s1286_s29 = sshll.u32 %s508_s26, 2  ;;  %v539_v14 = vshrl.u32 (%p515_p13), %v538_v13, 7 }
  0x1f   : > { %v540_v15 = vsub.s32 (%p515_p13), 0, %v539_v14 }
  0x20   : > { %s1783_s20 = scalar_lea.vmem %s1986_s0, %s1286_s29 }
  0x21   : > { %v520_v2 = vld [vmem:[%s1783_s20] sm:$0xf]  ;;  %v541_v16 = vrot.slane %v1767_v0, %v540_v15  ;;  %v548_v18 = vrot.slane %v1772_v1, %v540_v15 }
  0x22   : > { %v521_v3 = vunpack.c.l.bf16 %v520_v2 }
  0x24   : > { %v523_v4 = vsel %vm522_vm0, %v521_v3, 0.0 }
  0x25   : > { %524 = vadd.xlane.f32.xlu0 %v523_v4 }
  0xae   : > { %v525_v5 = vpop.xlane.xlu0 %524 }
  0xaf   : > { %v527_v6 = vmul.f32 0.03125, %v525_v5 }
  0xb1   : > { %v528_v7 = vsub.f32 %v521_v3, %v527_v6 }
  0xb3   : > { %v529_v8 = vmul.f32 %v528_v7, %v528_v7 }
  0xb5   : > { %v530_v9 = vsel %vm522_vm0, %v529_v8, 0.0 }
  0xb6   : > { %531 = vadd.xlane.f32.xlu0 %v530_v9 }
 0x13f   : > { %v532_v10 = vpop.xlane.xlu0 %531 }
 0x140   : > { %v533_v11 = vmul.f32 0.03125, %v532_v10 }
 0x142   : > { %v534_v12 = vadd.f32 1e-05, %v533_v11 }
 0x144   : > { %1491 = vrsqrt.f32 %v534_v12 }
 0x151   : > { %v1492_v17 = vpop.eup %1491 }
 0x152   : > { %v536_v19 = vmul.f32 %v1492_v17, %v528_v7 }
 0x154   : > { %v543_v20 = vmul.f32 %v541_v16, %v536_v19 }
 0x156   : > { %v550_v21 = vadd.f32 %v548_v18, %v543_v20 }
 0x158   : > { %v551_v22 = vpack.c.bf16 %v550_v21, %v550_v21 }
 0x15a   : > { %553 = vst.msk [vmem:[#allocation3] sm:$0xf] %vm552_vm1, %v551_v22 }
 0x15b PF: > { %s1790_s23 = sshll.u32 %s1588_s21, 4  ;;  %v1606_v23 = vmov 0.0   ;;  %vm1607_vm2 = vmmov 0   ;;  %vm585_vm3 = vcmask 261120   ;;  %v629_v29 = vld [vmem:[%s1783_s20] sm:$0xf]  ;;  %s565_s29 = scalar_lea.vmem %s1953_s4, %s1588_s21 }
 0x15c   : > { %1356 = vmatprep.subr.bf16.mxu0 %v1606_v23  ;;  %1364 = vmatprep.subr.bf16.mxu1 %v1606_v23  ;;  %s560_s28 = scalar_lea.vmem %s1952_s3, %s1790_s23  ;;  %s631_s26 = scalar_lea.vmem %s1954_s5, %s1790_s23  ;;  %v1290_v30 = vld [vmem:[%s565_s29] ss:$0 sm:$0xff]  ;;  %vm702_vm4 = vcmask 125952  }
 0x15d   : > { %v1493_v24 = vld [vmem:[%s560_s28 + $0x8] sm:$0xff]   ;;  %1360 = vmatprep.mubr.msk.bf16.mxu0 %vm1607_vm2, %v1606_v23  ;;  %1368 = vmatprep.mubr.msk.bf16.mxu1 %vm1607_vm2, %v1606_v23  ;;  %v1495_v26 = vld [vmem:[%s560_s28] sm:$0xff]   ;;  %s636_s27 = scalar_lea.vmem %s1955_s6, %s1588_s21  ;;  %p1301_p0 = scmp.ne.s32.totalorder %s1588_s21, 0 }
 0x15e   : > { %v1494_v25 = vld [vmem:[%s631_s26 + $0x8] sm:$0xff]   ;;  %1357 = vmatpush3.bf16.msra.mxu0 %v1493_v24  ;;  %v1496_v27 = vld [vmem:[%s631_s26] sm:$0xff]   ;;  %s1299_s26 = sshll.u32 %s1588_s21, 2 }
 0x15f   : > { %1365 = vmatpush3.bf16.msra.mxu1 %v1494_v25  ;;  %1358 = vmatprep.subr.bf16.mxu0 %v1606_v23  ;;  %v1295_v31 = vld [vmem:[%s636_s27] ss:$0 sm:$0xff]  ;;  %s1820_s18 = scalar_lea.vmem [#allocation4], %s1299_s26  ;;  %s1823_s24 = scalar_lea.vmem [#allocation5], %s1299_s26 }
 0x160   : > { %1366 = vmatprep.subr.bf16.mxu1 %v1606_v23 }
 0x161   : > { %v557_v28 = vld [vmem:[#allocation3] sm:$0xf] }
 0x162   : > { %1359 = vmatpush3.bf16.msra.mxu0 %v1495_v26 }
 0x163   : > { %1367 = vmatpush3.bf16.msra.mxu1 %v1496_v27 }
 0x165   : > { %1361 = vmatmul.mubr.msk.bf16.vlgmr.msra.gmra.mxu0 %vm585_vm3, %v557_v28 }
 0x166   : > { %1369 = vmatmul.mubr.msk.bf16.vlgmr.msra.gmra.mxu1 %vm585_vm3, %v629_v29 }
 0x225   : > { %v623_v32 = vpop.f32.mrf.mxu0 }
 0x226   : > { %v624_v33 = vadd.f32 %v1290_v30, %v623_v32  ;;  %v693_v34 = vpop.f32.mrf.mxu1 }
 0x227   : > { %v694_v35 = vadd.f32 %v1295_v31, %v693_v34  ;;  %v1362_v36 = vpop.f32.mrf.mxu0 }
 0x228   : > { %v699_v37 = vpack.c.bf16 %v624_v33, %v624_v33  ;;  %v1370_v38 = vpop.f32.mrf.mxu1  ;;  %710 = sbr.rel (%p1301_p0) target bundleno = 564 (0x234), region = 92 }
 0x229   : > { %v704_v39 = vpack.c.bf16 %v694_v35, %v694_v35  ;;  %v626_v40 = vpop.f32.mrf.mxu0 }
 0x22a   : > { %703 = vst.msk [vmem:[%s1820_s18] sm:$0xf] %vm702_vm4, %v699_v37  ;;  %v696_v41 = vpop.f32.mrf.mxu1 }
 0x22b   : > { %707 = vst.msk [vmem:[%s1823_s24] sm:$0xf] %vm702_vm4, %v704_v39  ;;  %v1363_v42 = vpop.f32.mrf.mxu0 }
 0x22c   : > { %v1371_v43 = vpop.f32.mrf.mxu1 }
 0x22d   : > { %v713_v44 = vlaneseq  ;;  %v1608_v45 = vmov 0.0   ;;  %vm722_vm5 = vcmask 64512   ;;  %v1609_v48 = vmov -1e+30  }
 0x22e   : > { %712 = vst.msk [vmem:[#allocation2] sm:$0xff] %vm585_vm3, %v1608_v45 }
 0x22f   : > { %v714_v46 = vshrl.u32 %v713_v44, 7  ;;  %v719_v47 = vand.u32 127, %v713_v44 }
 0x231   : > { %vm720_vm6 = vcmp.le.s32.totalorder %v719_v47, %v714_v46 }
 0x232   : > { %v721_v49 = vsel %vm720_vm6, 0.0, %v1609_v48 }
 0x233   : > { %723 = vst.msk [vmem:[#allocation6] sm:$0xff] %vm722_vm5, %v721_v49 }
 0x234 PF: > { %1372 = vmatprep.subr.bf16.mxu0 %v1606_v23  ;;  %s732_s29 = scalar_lea.vmem %s1950_s1, %s1790_s23  ;;  %1376 = vmatprep.mubr.msk.bf16.mxu0 %vm1607_vm2, %v1606_v23  ;;  %v1840_v52 = vld [vmem:[%s1783_s20] sm:$0xf]  ;;  %vm807_vm7 = vcmask 130048   ;;  %s737_s20 = scalar_lea.vmem %s1951_s2, %s1588_s21  ;;  %vm854_vm8 = vcmask 64512   ;;  %vm873_vm9 = vcmask 1043456  }
 0x235   : > { %v1497_v50 = vld [vmem:[%s732_s29 + $0x8] sm:$0xff]   ;;  %1380 = vmatprep.subr.bf16.mxu1 %v1606_v23  ;;  %1382 = vmatprep.mubr.msk.bf16.mxu1 %vm1607_vm2, %v1606_v23  ;;  %v1498_v51 = vld [vmem:[%s732_s29] sm:$0xff]   ;;  %p1316_p1 = scmp.ne.s32.totalorder %s1588_s21, 1 }
 0x236   : > { %1373 = vmatpush3.bf16.msra.mxu0 %v1497_v50  ;;  %v1304_v55 = vld [vmem:[%s737_s20] ss:$0 sm:$0xff]  ;;  %s1987_s23 = scalar_lea.vmem (!%p1316_p1), [#allocation7], %s1776_s17 }
 0x237   : > { %1374 = vmatprep.subr.bf16.mxu0 %v1606_v23  ;;  %v917_v25 = vld [vmem:[#allocation2] sm:$0xff] }
 0x238   : > { %v805_v53 = vld [vmem:[%s1820_s18] sm:$0xf]  ;;  %s1334_s18 = sshll.u32 %s1588_s21, 3 }
 0x239   : > { %v812_v54 = vsel %vm807_vm7, %v805_v53, 0  ;;  %v869_v13 = vld [vmem:[%s1823_s24] sm:$0xf]  ;;  %s921_s27 = scalar_lea.vmem %s1956_s7, %s1334_s18 }
 0x23a   : > { %1375 = vmatpush3.bf16.msra.mxu0 %v1498_v51  ;;  %1381 = vmatpush3.bf16.xpose.msra.mxu1 %v812_v54  ;;  %v806_v63 = vld [vmem:[#allocation6] sm:$0xff]  ;;  %v875_v14 = vsel %vm873_vm9, %v869_v13, 0 }
 0x23b   : > { %1386 = vmatprep.subr.bf16.mxu0 %v1606_v23  ;;  %1392 = vmatprep.subr.bf16.mxu1 %v1606_v23  ;;  %v1499_v15 = vld [vmem:[%s921_s27] sm:$0xff]  }
 0x23d   : > { %1377 = vmatmul.mubr.msk.bf16.vlgmr.msra.gmra.mxu0 %vm585_vm3, %v1840_v52 }
 0x23e   : > { %1388 = vmatprep.mubr.msk.bf16.mxu0 %vm1607_vm2, %v1606_v23  ;;  %1387 = vmatpush3.bf16.msra.mxu0 %v875_v14 }
 0x2fd   : > { %v795_v56 = vpop.f32.mrf.mxu0 }
 0x2fe   : > { %v796_v57 = vadd.f32 %v1304_v55, %v795_v56 }
 0x2ff   : > { %v1378_v58 = vpop.f32.mrf.mxu0 }
 0x300   : > { %v801_v59 = vmul.f32 0.25, %v796_v57 }
 0x301   : > { %v798_v60 = vpop.f32.mrf.mxu0 }
 0x302   : > { %v802_v61 = vpack.c.bf16 %v801_v59, %v801_v59 }
 0x303   : > { %v1379_v62 = vpop.f32.mrf.mxu0 }
 0x304   : > { %1383 = vmatmul.mubr.msk.bf16.vlgmr.msra.gmra.mxu1 %vm807_vm7, %v802_v61 }
 0x305   : > { %1394 = vmatprep.mubr.msk.bf16.mxu1 %vm1607_vm2, %v1606_v23  ;;  %1393 = vmatpush3.bf16.msra.mxu1 %v1499_v15 }
 0x3c4   : > { %v848_v2 = vpop.f32.mrf.mxu1 }
 0x3c5   : > { %v849_v3 = vadd.f32 %v848_v2, %v806_v63 }
 0x3c6   : > { %v1384_v4 = vpop.f32.mrf.mxu1 }
 0x3c7   : > { %v855_v5 = vsel %vm854_vm8, %v849_v3, -inf }
 0x3c8   : > { %856 = vmax.xlane.f32.xlu0 %v855_v5  ;;  %v851_v6 = vpop.f32.mrf.mxu1 }
 0x3ca   : > { %v1385_v7 = vpop.f32.mrf.mxu1 }
 0x451   : > { %v857_v8 = vpop.xlane.xlu0 %856 }
 0x452   : > { %v858_v9 = vsub.f32 %v849_v3, %v857_v8 }
 0x454   : > { %v859_v10 = vmul.f32 1.442695, %v858_v9 }
 0x456   : > { %1500 = vpow2.f32 %v859_v10 }
 0x463   : > { %v1501_v11 = vpop.eup %1500 }
 0x464   : > { %v861_v12 = vsel %vm854_vm8, %v1501_v11, 0.0 }
 0x465   : > { %862 = vadd.xlane.f32.xlu0 %v861_v12 }
 0x4ee   : > { %v863_v16 = vpop.xlane.xlu0 %862 }
 0x4ef   : > { %1502 = vrcp.f32 %v863_v16 }
 0x4fc   : > { %v1503_v17 = vpop.eup %1502 }
 0x4fd   : > { %v865_v18 = vmul.f32 %v1503_v17, %v1501_v11 }
 0x4ff   : > { %v866_v19 = vpack.c.bf16 %v865_v18, %v865_v18 }
 0x501   : > { %1389 = vmatmul.mubr.msk.bf16.vlgmr.msra.gmra.mxu0 %vm854_vm8, %v866_v19 }
 0x5c1   : > { %v911_v20 = vpop.f32.mrf.mxu0 }
 0x5c2   : > { %v918_v21 = vpack.c.bf16 %v911_v20, %v911_v20 }
 0x5c3   : > { %v1390_v22 = vpop.f32.mrf.mxu0 }
 0x5c4   : > { %1395 = vmatmul.mubr.msk.bf16.vlgmr.msra.gmra.mxu1 %vm807_vm7, %v918_v21 }
 0x5c5   : > { %v914_v23 = vpop.f32.mrf.mxu0 }
 0x5c7   : > { %v1391_v24 = vpop.f32.mrf.mxu0 }
 0x684   : > { %v967_v26 = vpop.f32.mrf.mxu1 }
 0x685   : > { %v973_v27 = vadd.f32 %v967_v26, %v917_v25 }
 0x686   : > { %v1396_v28 = vpop.f32.mrf.mxu1  ;;  %978 = sbr.rel (%p1316_p1) target bundleno = 2698 (0xa8a), region = 96 }
 0x687   : > { %974 = vst.msk [vmem:[#allocation2] sm:$0xff] %vm585_vm3, %v973_v27 }
 0x688   : > { %v970_v29 = vpop.f32.mrf.mxu1 }
 0x68a   : > { %v1397_v30 = vpop.f32.mrf.mxu1 }
 0x68b   : > { %v1317_v32 = vld [vmem:[%s1957_s8] ss:$0 sm:$0xff]  ;;  %v1504_v40 = vld [vmem:[%s1960_s11 + $0x8] sm:$0xff]   ;;  %v1610_v41 = vmov 0.0   ;;  %vm1611_vm10 = vmmov 0   ;;  %v1004_v46 = vlaneseq  ;;  %v979_v54 = vunpack.c.l.bf16 %v1840_v52 }
 0x68c   : > { %1398 = vmatprep.subr.bf16.mxu0 %v1610_v41  ;;  %1402 = vmatprep.mubr.msk.bf16.mxu0 %vm1611_vm10, %v1610_v41  ;;  %v1505_v42 = vld [vmem:[%s1960_s11] sm:$0xff]   ;;  %v1506_v59 = vld [vmem:[%s1962_s13 + $0x8] sm:$0xff]  }
 0x68d   : > { %1399 = vmatpush3.bf16.msra.mxu0 %v1504_v40  ;;  %1406 = vmatprep.subr.bf16.mxu1 %v1610_v41  ;;  %v1005_v47 = vshrl.u32 %v1004_v46, 7  ;;  %v1322_v4 = vld [vmem:[%s1963_s14] ss:$0 sm:$0xff] }
 0x68e   : > { %v980_v31 = vld [vmem:[#allocation2] sm:$0xff]  ;;  %1400 = vmatprep.subr.bf16.mxu0 %v1610_v41  ;;  %1410 = vmatprep.mubr.msk.bf16.mxu1 %vm1611_vm10, %v1610_v41 }
 0x68f   : > { %v988_v33 = vadd.f32 %v1317_v32, %v980_v31  ;;  %v1006_v48 = vsub.s32 0, %v1005_v47  ;;  %1407 = vmatpush3.bf16.msra.mxu1 %v1506_v59 }
 0x690   : > { %1408 = vmatprep.subr.bf16.mxu1 %v1610_v41 }
 0x691   : > { %v989_v34 = vsel %vm585_vm3, %v988_v33, 0.0  ;;  %1401 = vmatpush3.bf16.msra.mxu0 %v1505_v42  ;;  %v1007_v49 = vrot.slane %v1767_v0, %v1006_v48  ;;  %v1014_v53 = vrot.slane %v1772_v1, %v1006_v48  ;;  %v1507_v0 = vld [vmem:[%s1962_s13] sm:$0xff]  }
 0x692   : > { %990 = vadd.xlane.f32.xlu0 %v989_v34  ;;  %v1318_v1 = vld [vmem:[%s1961_s12] ss:$0 sm:$0xff] }
 0x693   : > { %1409 = vmatpush3.bf16.msra.mxu1 %v1507_v0 }
 0x71b   : > { %v991_v35 = vpop.xlane.xlu0 %990 }
 0x71c   : > { %v993_v36 = vmul.f32 0.03125, %v991_v35 }
 0x71e   : > { %v994_v37 = vsub.f32 %v988_v33, %v993_v36 }
 0x720   : > { %v995_v38 = vmul.f32 %v994_v37, %v994_v37 }
 0x722   : > { %v996_v39 = vsel %vm585_vm3, %v995_v38, 0.0 }
 0x723   : > { %997 = vadd.xlane.f32.xlu0 %v996_v39 }
 0x7ac   : > { %v998_v43 = vpop.xlane.xlu0 %997 }
 0x7ad   : > { %v999_v44 = vmul.f32 0.03125, %v998_v43 }
 0x7af   : > { %v1000_v45 = vadd.f32 1e-05, %v999_v44 }
 0x7b1   : > { %1508 = vrsqrt.f32 %v1000_v45 }
 0x7be   : > { %v1509_v50 = vpop.eup %1508 }
 0x7bf   : > { %v1002_v51 = vmul.f32 %v1509_v50, %v994_v37 }
 0x7c1   : > { %v1009_v55 = vmul.f32 %v1007_v49, %v1002_v51 }
 0x7c3   : > { %v1016_v56 = vadd.f32 %v1014_v53, %v1009_v55 }
 0x7c5   : > { %v1017_v57 = vadd.f32 %v1016_v56, %v979_v54 }
 0x7c7   : > { %v1018_v58 = vpack.c.bf16 %v1017_v57, %v1017_v57 }
 0x7c9   : > { %1403 = vmatmul.mubr.msk.bf16.vlgmr.msra.gmra.mxu0 %vm585_vm3, %v1018_v58 }
 0x889   : > { %v1079_v52 = vpop.f32.mrf.mxu0 }
 0x88a   : > { %v1080_v60 = vadd.f32 %v1318_v1, %v1079_v52 }
 0x88b   : > { %v1404_v61 = vpop.f32.mrf.mxu0 }
 0x88c   : > { %v1085_v62 = vmax.f32 %v1080_v60, 0.0 }
 0x88d   : > { %v1082_v63 = vpop.f32.mrf.mxu0 }
 0x88e   : > { %v1086_v2 = vpack.c.bf16 %v1085_v62, %v1085_v62 }
 0x88f   : > { %v1405_v3 = vpop.f32.mrf.mxu0 }
 0x890   : > { %1411 = vmatmul.mubr.msk.bf16.vlgmr.msra.gmra.mxu1 %vm585_vm3, %v1086_v2 }
 0x950   : > { %v1147_v5 = vpop.f32.mrf.mxu1 }
 0x951   : > { %v1148_v6 = vadd.f32 %v1322_v4, %v1147_v5 }
 0x952   : > { %v1412_v7 = vpop.f32.mrf.mxu1 }
 0x953   : > { %v1153_v8 = vsel %vm585_vm3, %v1148_v6, 0.0 }
 0x954   : > { %1154 = vadd.xlane.f32.xlu1 %v1153_v8  ;;  %v1150_v9 = vpop.f32.mrf.mxu1 }
 0x956   : > { %v1413_v10 = vpop.f32.mrf.mxu1 }
 0x9dd   : > { %v1155_v11 = vpop.xlane.xlu1 %1154 }
 0x9de   : > { %v1156_v12 = vmul.f32 0.03125, %v1155_v11 }
 0x9e0   : > { %v1157_v13 = vsub.f32 %v1148_v6, %v1156_v12 }
 0x9e2   : > { %v1158_v14 = vmul.f32 %v1157_v13, %v1157_v13 }
 0x9e4   : > { %v1159_v15 = vsel %vm585_vm3, %v1158_v14, 0.0 }
 0x9e5   : > { %1160 = vadd.xlane.f32.xlu1 %v1159_v15 }
 0xa6e   : > { %v1161_v16 = vpop.xlane.xlu1 %1160 }
 0xa6f   : > { %v1162_v17 = vmul.f32 0.03125, %v1161_v16 }
 0xa71   : > { %v1163_v18 = vadd.f32 1e-05, %v1162_v17 }
 0xa73   : > { %1510 = vrsqrt.f32 %v1163_v18 }
 0xa80   : > { %v1511_v19 = vpop.eup %1510 }
 0xa81   : > { %v1165_v20 = vmul.f32 %v1511_v19, %v1157_v13 }
 0xa83   : > { %v1166_v21 = vmul.f32 %v1165_v20, %v1007_v49 }
 0xa85   : > { %v1167_v22 = vadd.f32 %v1166_v21, %v1014_v53 }
 0xa87   : > { %v1168_v23 = vadd.f32 %v1167_v22, %v1017_v57 }
 0xa89   : > { %1169 = vst.msk [vmem:[%s1987_s23] sm:$0xff] %vm585_vm3, %v1168_v23 }
 0xa8a PF: > { %s1327_s21 = sshll.u32 %s1592_s22, 7  ;;  %s1988_s16 = scalar_lea.vmem [#allocation7], %s1776_s17 }
 0xa8b   : > { %s1183_s18 = scalar_lea.hbm %s1964_s15, %s1327_s21  ;;  %s1185_s26 = sshll.u32 %s1988_s16, 4  ;;  %s1186_s26 = int_to_ptr.vmem [resolvable:$true] %s1185_s26 }
 0xa8c   : > { %s1989_s27 = sand.u32 1, %s1580_s19   ;;  %s1512_s25 = scalar_lea.vmem %s1186_s26, 128 }
 0xa8d   : > { %s1171_s24 = scalar_lea.sflag [#allocation8], %s1989_s27  ;;  %p1513_p2 = scmp.ne.s32.totalorder %s1186_s26, %s1512_s25 }
 0xa8e   : > { %s1612_s29 = smov [#allocation7]  }
 0xa8f   : > { %p1514_p4 = pnand %p1513_p2, %p1742_p3  ;;  %s1516_s23 = sshll.u32 %s1612_s29, 4  ;;  %s1517_s23 = int_to_ptr.vmem [resolvable:$false] %s1516_s23 }
 0xa90   : > { %s1518_s0 = scalar_lea.vmem %s1517_s23, 256  ;;  %p1519_p6 = scmp.lt.s32.totalorder %s1186_s26, %s1517_s23 }
 0xa91   : > { %p1515_p5 = pneg %p1514_p4  ;;  %p1520_p7 = scmp.lt.s32.totalorder %s1518_s0, %s1512_s25 }
 0xa93   : > { %p1521_p8 = por %p1520_p7, %p1519_p6 }
 0xa95   : > { %p1522_p10 = pnand %p1521_p8, %p1515_p5 }
 0xa97   : > { %1525 = shalt.err (!%p1522_p10)
}
 0xa98   : > { %s1526_s22 = scalar_lea.hbm %s1183_s18, 128  ;;  %s1530_s28 = scalar_lea.hbm %s1964_s15, 256 }
 0xa99   : > { %p1527_p11 = scmp.ne.s32.totalorder %s1183_s18, %s1526_s22  ;;  %p1531_p0 = scmp.lt.s32.totalorder %s1183_s18, %s1964_s15 }
 0xa9a   : > { %p1532_p1 = scmp.lt.s32.totalorder %s1530_s28, %s1526_s22 }
 0xa9b   : > { %p1528_p12 = pnand %p1527_p11, %p1742_p3 }
 0xa9c   : > { %p1533_p2 = por %p1532_p1, %p1531_p0 }
 0xa9d   : > { %p1529_p13 = pneg %p1528_p12 }
 0xa9f   : > { %p1534_p4 = pnand %p1533_p2, %p1529_p13 }
 0xaa1   : > { %1537 = shalt.err (!%p1534_p4)
}
 0xaa2   : > { %1414 = dma.vmem_to_hbm [thread:$0]  (%p1742_p3), %s1186_s26, 128, %s1183_s18, %s1171_s24  }
 0xaa3 PF: > { %s1990_s0 = sld [smem:[#allocation14_spill]] }
 0xaa4   : > { %s1991_s27 = sld [smem:[#allocation10_spill]] }
 0xaa9   : > { %p1420_p5 = scmp.ge.s32.totalorder %s1990_s0, 2 }
 0xaaa   : > { %s1197_s29 = sand.u32 1, %s1991_s27  }
 0xaab   : > { %p1417_p6 = pnand %p1420_p5, %p1752_p9  ;;  %s1198_s23 = scalar_lea.sflag [#allocation8], %s1197_s29 }
 0xaad   : > { %p1418_p7 = pneg %p1417_p6 }
 0xaaf   : > { %1571 = dma.done.wait (%p1418_p7), %s1198_s23, 128  }
 0xab0   : > { %1573 = vsyncadd (%p1418_p7), %s1198_s23, 4294967168  ;;  %s28_s25 = sadd.s32 1, %s1990_s0   ;;  %s1993_s22 = sld [smem:[#allocation11_spill]] }
 0xab1   : > { %p25_p8 = scmp.ge.s32.totalorder %s28_s25, 6   ;;  %s1994_s20 = sld [smem:[#allocation18_spill]] }
 0xab2   : > { %s1995_s21 = sld [smem:[#allocation12_spill]]  ;;  %s1999_s18 = smov %s1580_s19 }
 0xab3   : > { %s1996_s30 = sld [smem:[#allocation13_spill]] }
 0xab4   : > { %s1997_s23 = sld [smem:[#allocation15_spill]] }
 0xab5   : > { %s1998_s24 = sld [smem:[#allocation16_spill]]  ;;  %27 = sbr.rel (!%p25_p8) target bundleno = 7 (0x7), region = 143 }
 0xab6   : > { %s2000_s19 = smov %s1993_s22 }
 0xab9   : > { %s2001_s22 = smov %s1996_s30 }
 0xaba   :  { %1203 = vsyncpa [#allocation8], 1 }
 0xabb   :  { %1205 = vsyncpa [#allocation8 + $0x1], 1 }

// kernel: tpu_custom_call.1
= control target key start
LH: loop header
LB: loop body
LE: loop exit
PB: predicated region body
PF: predicated region fallthrough
CT: control target
= control target key end

     0   :  { %s1949_s0 = inlined_call_operand.vmem [shape: bf16[2,8,32], index: 0, kind: input, shape index: {}]   ;;  %s1950_s1 = inlined_call_operand.vmem [shape: bf16[2,32,16], index: 1, kind: input, shape index: {}]   ;;  %s1951_s2 = inlined_call_operand.vmem [shape: f32[2,1,16], index: 2, kind: input, shape index: {}]   ;;  %s1952_s3 = inlined_call_operand.vmem [shape: bf16[2,32,16], index: 3, kind: input, shape index: {}]   ;;  %s1953_s4 = inlined_call_operand.vmem [shape: f32[2,1,16], index: 4, kind: input, shape index: {}]   ;;  %s1954_s5 = inlined_call_operand.vmem [shape: bf16[2,32,16], index: 5, kind: input, shape index: {}]   ;;  %s1955_s6 = inlined_call_operand.vmem [shape: f32[2,1,16], index: 6, kind: input, shape index: {}]   ;;  %s1956_s7 = inlined_call_operand.vmem [shape: bf16[2,16,32], index: 7, kind: input, shape index: {}]   ;;  %s1957_s8 = inlined_call_operand.vmem [shape: f32[1,32], index: 8, kind: input, shape index: {}]   ;;  %s1958_s9 = inlined_call_operand.vmem [shape: f32[1,32], index: 9, kind: input, shape index: {}]   ;;  %s1959_s10 = inlined_call_operand.vmem [shape: f32[1,32], index: 10, kind: input, shape index: {}]   ;;  %s1960_s11 = inlined_call_operand.vmem [shape: bf16[32,32], index: 11, kind: input, shape index: {}]   ;;  %s1961_s12 = inlined_call_operand.vmem [shape: f32[1,32], index: 12, kind: input, shape index: {}]   ;;  %s1962_s13 = inlined_call_operand.vmem [shape: bf16[32,32], index: 13, kind: input, shape index: {}]   ;;  %s1963_s14 = inlined_call_operand.vmem [shape: f32[1,32], index: 14, kind: input, shape index: {}]   ;;  %s1964_s15 = inlined_call_operand.hbm [shape: f32[2,8,32], index: 15, kind: output, shape index: {}]  }
   0x1   :  { %1974 = sst [smem:[#allocation19_spill]] %s1949_s0 }
   0x2   :  { %20 = vsyncpa [#allocation8], 0 }
   0x3   :  { %22 = vsyncpa [#allocation8 + $0x1], 0  ;;  %s1693_s18 = smov 0   ;;  %s1695_s19 = smov 0  }
   0x4   :  { %s1697_s20 = smov 0   ;;  %s1699_s21 = smov 0  }
   0x5   :  { %s1701_s22 = smov 0   ;;  %s1703_s23 = smov 0  }
   0x6   :  { %s1705_s24 = smov 0   ;;  %s1707_s25 = smov 0  }
   0x7 LB: > { %1975 = sst [smem:[#allocation10_spill]] %s1576_s18  ;;  %s1280_s26 = sadd.s32 4294967295, %s1604_s25   ;;  %s1604_s25 = sphi %s1707_s25, %s28_s25   ;;  %s1600_s24 = sphi %s1705_s24, %s1998_s24   ;;  %s1596_s23 = sphi %s1703_s23, %s1997_s23   ;;  %s1592_s22 = sphi %s1701_s22, %s2001_s22   ;;  %s1588_s21 = sphi %s1699_s21, %s1995_s21   ;;  %s1584_s20 = sphi %s1697_s20, %s1994_s20   ;;  %s1580_s19 = sphi %s1695_s19, %s2000_s19   ;;  %s1576_s18 = sphi %s1693_s18, %s1999_s18  }
   0x8   : > { %1976 = sst [smem:[#allocation11_spill]] %s1584_s20  ;;  %s1281_s27 = sadd.s32 4294967294, %s1604_s25  }
   0x9   : > { %1977 = sst [smem:[#allocation12_spill]] %s1596_s23  ;;  %s40_s28 = sadd.s32 1, %s1596_s23 }
   0xa   : > { %1978 = sst [smem:[#allocation13_spill]] %s1600_s24  ;;  %p41_p0 = scmp.ge.s32.totalorder %s40_s28, 2 }
   0xb   : > { %1979 = sst [smem:[#allocation14_spill]] %s1604_s25  ;;  %s47_s29 = sadd.s32 1, %s1600_s24 }
   0xc   : > { %p386_p1 = scmp.ne.s32.totalorder %s1584_s20, %s1580_s19  ;;  %p387_p2 = scmp.eq.s32.totalorder %s1280_s26, 3 }
   0xd   : > { %s2003_s28 = smov (%p41_p0, %s40_s28), 0  ;;  %s2005_s29 = smov (!%p41_p0, %s47_s29), %s1600_s24 }
   0xe   : > { %1980 = sst [smem:[#allocation15_spill]] %s2003_s28  ;;  %p1742_p3 = por %p387_p2, %p386_p1 }
   0xf   : > { %p392_p4 = scmp.ne.s32.totalorder %s1580_s19, %s1576_s18  ;;  %p49_p5 = scmp.ge.s32.totalorder %s2005_s29, 2 }
  0x10   : > { %p393_p6 = scmp.eq.s32.totalorder %s1281_s27, 3  ;;  %p1284_p7 = scmp.ge.s32.totalorder %s1604_s25, 1 }
  0x11   : > { %p460_p8 = scmp.lt.s32.totalorder %s1604_s25, 5  ;;  %s2007_s29 = smov (%p49_p5, %s2005_s29), 0 }
  0x12   : > { %1982 = sst [smem:[#allocation16_spill]] %s2007_s29  ;;  %p1752_p9 = por %p393_p6, %p392_p4 }
  0x13   : > { %p461_p10 = pnand %p1284_p7, %p460_p8  ;;  %s371_s17 = ssub.s32 %s1600_s24, %s2007_s29 }
  0x14   : > { %s1983_s16 = scalar_select %p1752_p9, 1, 0 }
  0x15   : > { %s376_s26 = sadd.s32 1, %s1584_s20  ;;  %p374_p11 = scmp.eq.s32.totalorder %s371_s17, 0 }
  0x16   : > { %1984 = sst [smem:[#allocation17_spill]] %s1983_s16  ;;  %464 = sbr.rel (%p461_p10) target bundleno = 2723 (0xaa3), region = 80 }
  0x17   : > { %s1760_s28 = scalar_select %p374_p11, %s1584_s20, %s376_s26  }
  0x18   : > { %s1973_s27 = sand.u32 (!%p461_p10), 1, %s1580_s19   ;;  %p507_p12 = scmp.lt.s32.totalorder (!%p461_p10), %s1592_s22, 1 }
  0x19   : > { %1985 = sst [smem:[#allocation18_spill]] %s1760_s28  ;;  %s1776_s17 = sshll.u32 (!%p461_p10), %s1973_s27, 3 }
  0x1a   : > { %p515_p13 = scmp.eq.s32.totalorder (!%p461_p10), %s1588_s21, 0  ;;  %s1986_s0 = sld [smem:[#allocation19_spill]] (!%p461_p10) }
  0x1b   : > { %v1767_v0 = vld [vmem:[%s1958_s9] sm:$0x1]  ;;  %s508_s26 = scalar_select %p507_p12, %s1592_s22, 1  ;;  %vm522_vm0 = vcmask (%p515_p13), 261120   ;;  %v538_v13 = vlaneseq (%p515_p13)  ;;  %vm552_vm1 = vcmask (%p515_p13), 257024  }
  0x1c   : > { %v1772_v1 = vld [vmem:[%s1959_s10] sm:$0x1]  ;;  %519 = sbr.rel (!%p515_p13) target bundleno = 347 (0x15b), region = 84 }
  0x1d   : > { %s1286_s29 = sshll.u32 %s508_s26, 2  ;;  %v539_v14 = vshrl.u32 (%p515_p13), %v538_v13, 7 }
  0x1f   : > { %v540_v15 = vsub.s32 (%p515_p13), 0, %v539_v14 }
  0x20   : > { %s1783_s20 = scalar_lea.vmem %s1986_s0, %s1286_s29 }
  0x21   : > { %v520_v2 = vld [vmem:[%s1783_s20] sm:$0xf]  ;;  %v541_v16 = vrot.slane %v1767_v0, %v540_v15  ;;  %v548_v18 = vrot.slane %v1772_v1, %v540_v15 }
  0x22   : > { %v521_v3 = vunpack.c.l.bf16 %v520_v2 }
  0x24   : > { %v523_v4 = vsel %vm522_vm0, %v521_v3, 0.0 }
  0x25   : > { %524 = vadd.xlane.f32.xlu0 %v523_v4 }
  0xae   : > { %v525_v5 = vpop.xlane.xlu0 %524 }
  0xaf   : > { %v527_v6 = vmul.f32 0.03125, %v525_v5 }
  0xb1   : > { %v528_v7 = vsub.f32 %v521_v3, %v527_v6 }
  0xb3   : > { %v529_v8 = vmul.f32 %v528_v7, %v528_v7 }
  0xb5   : > { %v530_v9 = vsel %vm522_vm0, %v529_v8, 0.0 }
  0xb6   : > { %531 = vadd.xlane.f32.xlu0 %v530_v9 }
 0x13f   : > { %v532_v10 = vpop.xlane.xlu0 %531 }
 0x140   : > { %v533_v11 = vmul.f32 0.03125, %v532_v10 }
 0x142   : > { %v534_v12 = vadd.f32 1e-05, %v533_v11 }
 0x144   : > { %1491 = vrsqrt.f32 %v534_v12 }
 0x151   : > { %v1492_v17 = vpop.eup %1491 }
 0x152   : > { %v536_v19 = vmul.f32 %v1492_v17, %v528_v7 }
 0x154   : > { %v543_v20 = vmul.f32 %v541_v16, %v536_v19 }
 0x156   : > { %v550_v21 = vadd.f32 %v548_v18, %v543_v20 }
 0x158   : > { %v551_v22 = vpack.c.bf16 %v550_v21, %v550_v21 }
 0x15a   : > { %553 = vst.msk [vmem:[#allocation3] sm:$0xf] %vm552_vm1, %v551_v22 }
 0x15b PF: > { %s1790_s23 = sshll.u32 %s1588_s21, 4  ;;  %v1606_v23 = vmov 0.0   ;;  %vm1607_vm2 = vmmov 0   ;;  %vm585_vm3 = vcmask 261120   ;;  %v629_v29 = vld [vmem:[%s1783_s20] sm:$0xf]  ;;  %s565_s29 = scalar_lea.vmem %s1953_s4, %s1588_s21 }
 0x15c   : > { %1356 = vmatprep.subr.bf16.mxu0 %v1606_v23  ;;  %1364 = vmatprep.subr.bf16.mxu1 %v1606_v23  ;;  %s560_s28 = scalar_lea.vmem %s1952_s3, %s1790_s23  ;;  %s631_s26 = scalar_lea.vmem %s1954_s5, %s1790_s23  ;;  %v1290_v30 = vld [vmem:[%s565_s29] ss:$0 sm:$0xff]  ;;  %vm702_vm4 = vcmask 125952  }
 0x15d   : > { %v1493_v24 = vld [vmem:[%s560_s28 + $0x8] sm:$0xff]   ;;  %1360 = vmatprep.mubr.msk.bf16.mxu0 %vm1607_vm2, %v1606_v23  ;;  %1368 = vmatprep.mubr.msk.bf16.mxu1 %vm1607_vm2, %v1606_v23  ;;  %v1495_v26 = vld [vmem:[%s560_s28] sm:$0xff]   ;;  %s636_s27 = scalar_lea.vmem %s1955_s6, %s1588_s21  ;;  %p1301_p0 = scmp.ne.s32.totalorder %s1588_s21, 0 }
 0x15e   : > { %v1494_v25 = vld [vmem:[%s631_s26 + $0x8] sm:$0xff]   ;;  %1357 = vmatpush3.bf16.msra.mxu0 %v1493_v24  ;;  %v1496_v27 = vld [vmem:[%s631_s26] sm:$0xff]   ;;  %s1299_s26 = sshll.u32 %s1588_s21, 2 }
 0x15f   : > { %1365 = vmatpush3.bf16.msra.mxu1 %v1494_v25  ;;  %1358 = vmatprep.subr.bf16.mxu0 %v1606_v23  ;;  %v1295_v31 = vld [vmem:[%s636_s27] ss:$0 sm:$0xff]  ;;  %s1820_s18 = scalar_lea.vmem [#allocation4], %s1299_s26  ;;  %s1823_s24 = scalar_lea.vmem [#allocation5], %s1299_s26 }
 0x160   : > { %1366 = vmatprep.subr.bf16.mxu1 %v1606_v23 }
 0x161   : > { %v557_v28 = vld [vmem:[#allocation3] sm:$0xf] }
 0x162   : > { %1359 = vmatpush3.bf16.msra.mxu0 %v1495_v26 }
 0x163   : > { %1367 = vmatpush3.bf16.msra.mxu1 %v1496_v27 }
 0x165   : > { %1361 = vmatmul.mubr.msk.bf16.vlgmr.msra.gmra.mxu0 %vm585_vm3, %v557_v28 }
 0x166   : > { %1369 = vmatmul.mubr.msk.bf16.vlgmr.msra.gmra.mxu1 %vm585_vm3, %v629_v29 }
 0x225   : > { %v623_v32 = vpop.f32.mrf.mxu0 }
 0x226   : > { %v624_v33 = vadd.f32 %v1290_v30, %v623_v32  ;;  %v693_v34 = vpop.f32.mrf.mxu1 }
 0x227   : > { %v694_v35 = vadd.f32 %v1295_v31, %v693_v34  ;;  %v1362_v36 = vpop.f32.mrf.mxu0 }
 0x228   : > { %v699_v37 = vpack.c.bf16 %v624_v33, %v624_v33  ;;  %v1370_v38 = vpop.f32.mrf.mxu1  ;;  %710 = sbr.rel (%p1301_p0) target bundleno = 564 (0x234), region = 92 }
 0x229   : > { %v704_v39 = vpack.c.bf16 %v694_v35, %v694_v35  ;;  %v626_v40 = vpop.f32.mrf.mxu0 }
 0x22a   : > { %703 = vst.msk [vmem:[%s1820_s18] sm:$0xf] %vm702_vm4, %v699_v37  ;;  %v696_v41 = vpop.f32.mrf.mxu1 }
 0x22b   : > { %707 = vst.msk [vmem:[%s1823_s24] sm:$0xf] %vm702_vm4, %v704_v39  ;;  %v1363_v42 = vpop.f32.mrf.mxu0 }
 0x22c   : > { %v1371_v43 = vpop.f32.mrf.mxu1 }
 0x22d   : > { %v713_v44 = vlaneseq  ;;  %v1608_v45 = vmov 0.0   ;;  %vm722_vm5 = vcmask 64512   ;;  %v1609_v48 = vmov -1e+30  }
 0x22e   : > { %712 = vst.msk [vmem:[#allocation2] sm:$0xff] %vm585_vm3, %v1608_v45 }
 0x22f   : > { %v714_v46 = vshrl.u32 %v713_v44, 7  ;;  %v719_v47 = vand.u32 127, %v713_v44 }
 0x231   : > { %vm720_vm6 = vcmp.le.s32.totalorder %v719_v47, %v714_v46 }
 0x232   : > { %v721_v49 = vsel %vm720_vm6, 0.0, %v1609_v48 }
 0x233   : > { %723 = vst.msk [vmem:[#allocation6] sm:$0xff] %vm722_vm5, %v721_v49 }
 0x234 PF: > { %1372 = vmatprep.subr.bf16.mxu0 %v1606_v23  ;;  %s732_s29 = scalar_lea.vmem %s1950_s1, %s1790_s23  ;;  %1376 = vmatprep.mubr.msk.bf16.mxu0 %vm1607_vm2, %v1606_v23  ;;  %v1840_v52 = vld [vmem:[%s1783_s20] sm:$0xf]  ;;  %vm807_vm7 = vcmask 130048   ;;  %s737_s20 = scalar_lea.vmem %s1951_s2, %s1588_s21  ;;  %vm854_vm8 = vcmask 64512   ;;  %vm873_vm9 = vcmask 1043456  }
 0x235   : > { %v1497_v50 = vld [vmem:[%s732_s29 + $0x8] sm:$0xff]   ;;  %1380 = vmatprep.subr.bf16.mxu1 %v1606_v23  ;;  %1382 = vmatprep.mubr.msk.bf16.mxu1 %vm1607_vm2, %v1606_v23  ;;  %v1498_v51 = vld [vmem:[%s732_s29] sm:$0xff]   ;;  %p1316_p1 = scmp.ne.s32.totalorder %s1588_s21, 1 }
 0x236   : > { %1373 = vmatpush3.bf16.msra.mxu0 %v1497_v50  ;;  %v1304_v55 = vld [vmem:[%s737_s20] ss:$0 sm:$0xff]  ;;  %s1987_s23 = scalar_lea.vmem (!%p1316_p1), [#allocation7], %s1776_s17 }
 0x237   : > { %1374 = vmatprep.subr.bf16.mxu0 %v1606_v23  ;;  %v917_v25 = vld [vmem:[#allocation2] sm:$0xff] }
 0x238   : > { %v805_v53 = vld [vmem:[%s1820_s18] sm:$0xf]  ;;  %s1334_s18 = sshll.u32 %s1588_s21, 3 }
 0x239   : > { %v812_v54 = vsel %vm807_vm7, %v805_v53, 0  ;;  %v869_v13 = vld [vmem:[%s1823_s24] sm:$0xf]  ;;  %s921_s27 = scalar_lea.vmem %s1956_s7, %s1334_s18 }
 0x23a   : > { %1375 = vmatpush3.bf16.msra.mxu0 %v1498_v51  ;;  %1381 = vmatpush3.bf16.xpose.msra.mxu1 %v812_v54  ;;  %v806_v63 = vld [vmem:[#allocation6] sm:$0xff]  ;;  %v875_v14 = vsel %vm873_vm9, %v869_v13, 0 }
 0x23b   : > { %1386 = vmatprep.subr.bf16.mxu0 %v1606_v23  ;;  %1392 = vmatprep.subr.bf16.mxu1 %v1606_v23  ;;  %v1499_v15 = vld [vmem:[%s921_s27] sm:$0xff]  }
 0x23d   : > { %1377 = vmatmul.mubr.msk.bf16.vlgmr.msra.gmra.mxu0 %vm585_vm3, %v1840_v52 }
 0x23e   : > { %1388 = vmatprep.mubr.msk.bf16.mxu0 %vm1607_vm2, %v1606_v23  ;;  %1387 = vmatpush3.bf16.msra.mxu0 %v875_v14 }
 0x2fd   : > { %v795_v56 = vpop.f32.mrf.mxu0 }
 0x2fe   : > { %v796_v57 = vadd.f32 %v1304_v55, %v795_v56 }
 0x2ff   : > { %v1378_v58 = vpop.f32.mrf.mxu0 }
 0x300   : > { %v801_v59 = vmul.f32 0.25, %v796_v57 }
 0x301   : > { %v798_v60 = vpop.f32.mrf.mxu0 }
 0x302   : > { %v802_v61 = vpack.c.bf16 %v801_v59, %v801_v59 }
 0x303   : > { %v1379_v62 = vpop.f32.mrf.mxu0 }
 0x304   : > { %1383 = vmatmul.mubr.msk.bf16.vlgmr.msra.gmra.mxu1 %vm807_vm7, %v802_v61 }
 0x305   : > { %1394 = vmatprep.mubr.msk.bf16.mxu1 %vm1607_vm2, %v1606_v23  ;;  %1393 = vmatpush3.bf16.msra.mxu1 %v1499_v15 }
 0x3c4   : > { %v848_v2 = vpop.f32.mrf.mxu1 }
 0x3c5   : > { %v849_v3 = vadd.f32 %v848_v2, %v806_v63 }
 0x3c6   : > { %v1384_v4 = vpop.f32.mrf.mxu1 }
 0x3c7   : > { %v855_v5 = vsel %vm854_vm8, %v849_v3, -inf }
 0x3c8   : > { %856 = vmax.xlane.f32.xlu0 %v855_v5  ;;  %v851_v6 = vpop.f32.mrf.mxu1 }
 0x3ca   : > { %v1385_v7 = vpop.f32.mrf.mxu1 }
 0x451   : > { %v857_v8 = vpop.xlane.xlu0 %856 }
 0x452   : > { %v858_v9 = vsub.f32 %v849_v3, %v857_v8 }
 0x454   : > { %v859_v10 = vmul.f32 1.442695, %v858_v9 }
 0x456   : > { %1500 = vpow2.f32 %v859_v10 }
 0x463   : > { %v1501_v11 = vpop.eup %1500 }
 0x464   : > { %v861_v12 = vsel %vm854_vm8, %v1501_v11, 0.0 }
 0x465   : > { %862 = vadd.xlane.f32.xlu0 %v861_v12 }
 0x4ee   : > { %v863_v16 = vpop.xlane.xlu0 %862 }
 0x4ef   : > { %1502 = vrcp.f32 %v863_v16 }
 0x4fc   : > { %v1503_v17 = vpop.eup %1502 }
 0x4fd   : > { %v865_v18 = vmul.f32 %v1503_v17, %v1501_v11 }
 0x4ff   : > { %v866_v19 = vpack.c.bf16 %v865_v18, %v865_v18 }
 0x501   : > { %1389 = vmatmul.mubr.msk.bf16.vlgmr.msra.gmra.mxu0 %vm854_vm8, %v866_v19 }
 0x5c1   : > { %v911_v20 = vpop.f32.mrf.mxu0 }
 0x5c2   : > { %v918_v21 = vpack.c.bf16 %v911_v20, %v911_v20 }
 0x5c3   : > { %v1390_v22 = vpop.f32.mrf.mxu0 }
 0x5c4   : > { %1395 = vmatmul.mubr.msk.bf16.vlgmr.msra.gmra.mxu1 %vm807_vm7, %v918_v21 }
 0x5c5   : > { %v914_v23 = vpop.f32.mrf.mxu0 }
 0x5c7   : > { %v1391_v24 = vpop.f32.mrf.mxu0 }
 0x684   : > { %v967_v26 = vpop.f32.mrf.mxu1 }
 0x685   : > { %v973_v27 = vadd.f32 %v967_v26, %v917_v25 }
 0x686   : > { %v1396_v28 = vpop.f32.mrf.mxu1  ;;  %978 = sbr.rel (%p1316_p1) target bundleno = 2698 (0xa8a), region = 96 }
 0x687   : > { %974 = vst.msk [vmem:[#allocation2] sm:$0xff] %vm585_vm3, %v973_v27 }
 0x688   : > { %v970_v29 = vpop.f32.mrf.mxu1 }
 0x68a   : > { %v1397_v30 = vpop.f32.mrf.mxu1 }
 0x68b   : > { %v1317_v32 = vld [vmem:[%s1957_s8] ss:$0 sm:$0xff]  ;;  %v1504_v40 = vld [vmem:[%s1960_s11 + $0x8] sm:$0xff]   ;;  %v1610_v41 = vmov 0.0   ;;  %vm1611_vm10 = vmmov 0   ;;  %v1004_v46 = vlaneseq  ;;  %v979_v54 = vunpack.c.l.bf16 %v1840_v52 }
 0x68c   : > { %1398 = vmatprep.subr.bf16.mxu0 %v1610_v41  ;;  %1402 = vmatprep.mubr.msk.bf16.mxu0 %vm1611_vm10, %v1610_v41  ;;  %v1505_v42 = vld [vmem:[%s1960_s11] sm:$0xff]   ;;  %v1506_v59 = vld [vmem:[%s1962_s13 + $0x8] sm:$0xff]  }
 0x68d   : > { %1399 = vmatpush3.bf16.msra.mxu0 %v1504_v40  ;;  %1406 = vmatprep.subr.bf16.mxu1 %v1610_v41  ;;  %v1005_v47 = vshrl.u32 %v1004_v46, 7  ;;  %v1322_v4 = vld [vmem:[%s1963_s14] ss:$0 sm:$0xff] }
 0x68e   : > { %v980_v31 = vld [vmem:[#allocation2] sm:$0xff]  ;;  %1400 = vmatprep.subr.bf16.mxu0 %v1610_v41  ;;  %1410 = vmatprep.mubr.msk.bf16.mxu1 %vm1611_vm10, %v1610_v41 }
 0x68f   : > { %v988_v33 = vadd.f32 %v1317_v32, %v980_v31  ;;  %v1006_v48 = vsub.s32 0, %v1005_v47  ;;  %1407 = vmatpush3.bf16.msra.mxu1 %v1506_v59 }
 0x690   : > { %1408 = vmatprep.subr.bf16.mxu1 %v1610_v41 }
 0x691   : > { %v989_v34 = vsel %vm585_vm3, %v988_v33, 0.0  ;;  %1401 = vmatpush3.bf16.msra.mxu0 %v1505_v42  ;;  %v1007_v49 = vrot.slane %v1767_v0, %v1006_v48  ;;  %v1014_v53 = vrot.slane %v1772_v1, %v1006_v48  ;;  %v1507_v0 = vld [vmem:[%s1962_s13] sm:$0xff]  }
 0x692   : > { %990 = vadd.xlane.f32.xlu0 %v989_v34  ;;  %v1318_v1 = vld [vmem:[%s1961_s12] ss:$0 sm:$0xff] }
 0x693   : > { %1409 = vmatpush3.bf16.msra.mxu1 %v1507_v0 }
 0x71b   : > { %v991_v35 = vpop.xlane.xlu0 %990 }
 0x71c   : > { %v993_v36 = vmul.f32 0.03125, %v991_v35 }
 0x71e   : > { %v994_v37 = vsub.f32 %v988_v33, %v993_v36 }
 0x720   : > { %v995_v38 = vmul.f32 %v994_v37, %v994_v37 }
 0x722   : > { %v996_v39 = vsel %vm585_vm3, %v995_v38, 0.0 }
 0x723   : > { %997 = vadd.xlane.f32.xlu0 %v996_v39 }
 0x7ac   : > { %v998_v43 = vpop.xlane.xlu0 %997 }
 0x7ad   : > { %v999_v44 = vmul.f32 0.03125, %v998_v43 }
 0x7af   : > { %v1000_v45 = vadd.f32 1e-05, %v999_v44 }
 0x7b1   : > { %1508 = vrsqrt.f32 %v1000_v45 }
 0x7be   : > { %v1509_v50 = vpop.eup %1508 }
 0x7bf   : > { %v1002_v51 = vmul.f32 %v1509_v50, %v994_v37 }
 0x7c1   : > { %v1009_v55 = vmul.f32 %v1007_v49, %v1002_v51 }
 0x7c3   : > { %v1016_v56 = vadd.f32 %v1014_v53, %v1009_v55 }
 0x7c5   : > { %v1017_v57 = vadd.f32 %v1016_v56, %v979_v54 }
 0x7c7   : > { %v1018_v58 = vpack.c.bf16 %v1017_v57, %v1017_v57 }
 0x7c9   : > { %1403 = vmatmul.mubr.msk.bf16.vlgmr.msra.gmra.mxu0 %vm585_vm3, %v1018_v58 }
 0x889   : > { %v1079_v52 = vpop.f32.mrf.mxu0 }
 0x88a   : > { %v1080_v60 = vadd.f32 %v1318_v1, %v1079_v52 }
 0x88b   : > { %v1404_v61 = vpop.f32.mrf.mxu0 }
 0x88c   : > { %v1085_v62 = vmax.f32 %v1080_v60, 0.0 }
 0x88d   : > { %v1082_v63 = vpop.f32.mrf.mxu0 }
 0x88e   : > { %v1086_v2 = vpack.c.bf16 %v1085_v62, %v1085_v62 }
 0x88f   : > { %v1405_v3 = vpop.f32.mrf.mxu0 }
 0x890   : > { %1411 = vmatmul.mubr.msk.bf16.vlgmr.msra.gmra.mxu1 %vm585_vm3, %v1086_v2 }
 0x950   : > { %v1147_v5 = vpop.f32.mrf.mxu1 }
 0x951   : > { %v1148_v6 = vadd.f32 %v1322_v4, %v1147_v5 }
 0x952   : > { %v1412_v7 = vpop.f32.mrf.mxu1 }
 0x953   : > { %v1153_v8 = vsel %vm585_vm3, %v1148_v6, 0.0 }
 0x954   : > { %1154 = vadd.xlane.f32.xlu1 %v1153_v8  ;;  %v1150_v9 = vpop.f32.mrf.mxu1 }
 0x956   : > { %v1413_v10 = vpop.f32.mrf.mxu1 }
 0x9dd   : > { %v1155_v11 = vpop.xlane.xlu1 %1154 }
 0x9de   : > { %v1156_v12 = vmul.f32 0.03125, %v1155_v11 }
 0x9e0   : > { %v1157_v13 = vsub.f32 %v1148_v6, %v1156_v12 }
 0x9e2   : > { %v1158_v14 = vmul.f32 %v1157_v13, %v1157_v13 }
 0x9e4   : > { %v1159_v15 = vsel %vm585_vm3, %v1158_v14, 0.0 }
 0x9e5   : > { %1160 = vadd.xlane.f32.xlu1 %v1159_v15 }
 0xa6e   : > { %v1161_v16 = vpop.xlane.xlu1 %1160 }
 0xa6f   : > { %v1162_v17 = vmul.f32 0.03125, %v1161_v16 }
 0xa71   : > { %v1163_v18 = vadd.f32 1e-05, %v1162_v17 }
 0xa73   : > { %1510 = vrsqrt.f32 %v1163_v18 }
 0xa80   : > { %v1511_v19 = vpop.eup %1510 }
 0xa81   : > { %v1165_v20 = vmul.f32 %v1511_v19, %v1157_v13 }
 0xa83   : > { %v1166_v21 = vmul.f32 %v1165_v20, %v1007_v49 }
 0xa85   : > { %v1167_v22 = vadd.f32 %v1166_v21, %v1014_v53 }
 0xa87   : > { %v1168_v23 = vadd.f32 %v1167_v22, %v1017_v57 }
 0xa89   : > { %1169 = vst.msk [vmem:[%s1987_s23] sm:$0xff] %vm585_vm3, %v1168_v23 }
 0xa8a PF: > { %s1327_s21 = sshll.u32 %s1592_s22, 7  ;;  %s1988_s16 = scalar_lea.vmem [#allocation7], %s1776_s17 }
 0xa8b   : > { %s1183_s18 = scalar_lea.hbm %s1964_s15, %s1327_s21  ;;  %s1185_s26 = sshll.u32 %s1988_s16, 4  ;;  %s1186_s26 = int_to_ptr.vmem [resolvable:$true] %s1185_s26 }
 0xa8c   : > { %s1989_s27 = sand.u32 1, %s1580_s19   ;;  %s1512_s25 = scalar_lea.vmem %s1186_s26, 128 }
 0xa8d   : > { %s1171_s24 = scalar_lea.sflag [#allocation8], %s1989_s27  ;;  %p1513_p2 = scmp.ne.s32.totalorder %s1186_s26, %s1512_s25 }
 0xa8e   : > { %s1612_s29 = smov [#allocation7]  }
 0xa8f   : > { %p1514_p4 = pnand %p1513_p2, %p1742_p3  ;;  %s1516_s23 = sshll.u32 %s1612_s29, 4  ;;  %s1517_s23 = int_to_ptr.vmem [resolvable:$false] %s1516_s23 }
 0xa90   : > { %s1518_s0 = scalar_lea.vmem %s1517_s23, 256  ;;  %p1519_p6 = scmp.lt.s32.totalorder %s1186_s26, %s1517_s23 }
 0xa91   : > { %p1515_p5 = pneg %p1514_p4  ;;  %p1520_p7 = scmp.lt.s32.totalorder %s1518_s0, %s1512_s25 }
 0xa93   : > { %p1521_p8 = por %p1520_p7, %p1519_p6 }
 0xa95   : > { %p1522_p10 = pnand %p1521_p8, %p1515_p5 }
 0xa97   : > { %1525 = shalt.err (!%p1522_p10)
}
 0xa98   : > { %s1526_s22 = scalar_lea.hbm %s1183_s18, 128  ;;  %s1530_s28 = scalar_lea.hbm %s1964_s15, 256 }
 0xa99   : > { %p1527_p11 = scmp.ne.s32.totalorder %s1183_s18, %s1526_s22  ;;  %p1531_p0 = scmp.lt.s32.totalorder %s1183_s18, %s1964_s15 }
 0xa9a   : > { %p1532_p1 = scmp.lt.s32.totalorder %s1530_s28, %s1526_s22 }
 0xa9b   : > { %p1528_p12 = pnand %p1527_p11, %p1742_p3 }
 0xa9c   : > { %p1533_p2 = por %p1532_p1, %p1531_p0 }
 0xa9d   : > { %p1529_p13 = pneg %p1528_p12 }
 0xa9f   : > { %p1534_p4 = pnand %p1533_p2, %p1529_p13 }
 0xaa1   : > { %1537 = shalt.err (!%p1534_p4)
}
 0xaa2   : > { %1414 = dma.vmem_to_hbm [thread:$0]  (%p1742_p3), %s1186_s26, 128, %s1183_s18, %s1171_s24  }
 0xaa3 PF: > { %s1990_s0 = sld [smem:[#allocation14_spill]] }
 0xaa4   : > { %s1991_s27 = sld [smem:[#allocation10_spill]] }
 0xaa9   : > { %p1420_p5 = scmp.ge.s32.totalorder %s1990_s0, 2 }
 0xaaa   : > { %s1197_s29 = sand.u32 1, %s1991_s27  }
 0xaab   : > { %p1417_p6 = pnand %p1420_p5, %p1752_p9  ;;  %s1198_s23 = scalar_lea.sflag [#allocation8], %s1197_s29 }
 0xaad   : > { %p1418_p7 = pneg %p1417_p6 }
 0xaaf   : > { %1571 = dma.done.wait (%p1418_p7), %s1198_s23, 128  }
 0xab0   : > { %1573 = vsyncadd (%p1418_p7), %s1198_s23, 4294967168  ;;  %s28_s25 = sadd.s32 1, %s1990_s0   ;;  %s1993_s22 = sld [smem:[#allocation11_spill]] }
 0xab1   : > { %p25_p8 = scmp.ge.s32.totalorder %s28_s25, 6   ;;  %s1994_s20 = sld [smem:[#allocation18_spill]] }
 0xab2   : > { %s1995_s21 = sld [smem:[#allocation12_spill]]  ;;  %s1999_s18 = smov %s1580_s19 }
 0xab3   : > { %s1996_s30 = sld [smem:[#allocation13_spill]] }
 0xab4   : > { %s1997_s23 = sld [smem:[#allocation15_spill]] }
 0xab5   : > { %s1998_s24 = sld [smem:[#allocation16_spill]]  ;;  %27 = sbr.rel (!%p25_p8) target bundleno = 7 (0x7), region = 143 }
 0xab6   : > { %s2000_s19 = smov %s1993_s22 }
 0xab9   : > { %s2001_s22 = smov %s1996_s30 }
 0xaba   :  { %1203 = vsyncpa [#allocation8], 1 }
 0xabb   :  { %1205 = vsyncpa [#allocation8 + $0x1], 1 }

</bundles_post_ra>
